<compile_context>
chip_gen: v7x
topology: tpu7x:2x2x1
jax: 0.10.0
libtpu: 0.0.40
codegen_flags: <defaults>
</compile_context>

<pallas_src>
import functools

import jax
import jax.numpy as jnp
from jax.experimental import pallas as pl
from jax.experimental.pallas import tpu as pltpu


def _round_up(x, m):
    return ((x + m - 1) // m) * m


def _actor_kernel(s_ref, a_ref,
                  w1s_ref, w1a_ref, b1_ref,
                  w2_ref, b2_ref,
                  w3_ref, b3_ref,
                  out_ref, *, phi, max_action):
    # s_ref: [TB, S] f32, a_ref: [TB, A] f32
    # weights bf16 (halved DMA), biases f32; all accumulation / elementwise math in f32.
    s = s_ref[...]
    a = a_ref[...]

    # l1 + relu: split matmul replaces cat([state, action], 1) @ W1
    h1 = (jnp.dot(s.astype(jnp.bfloat16), w1s_ref[...],
                  preferred_element_type=jnp.float32)
          + jnp.dot(a.astype(jnp.bfloat16), w1a_ref[...],
                    preferred_element_type=jnp.float32)
          + b1_ref[...])
    h1 = jnp.maximum(h1, 0.0)

    # l2 + relu
    h2 = jnp.dot(h1.astype(jnp.bfloat16), w2_ref[...],
                 preferred_element_type=jnp.float32) + b2_ref[...]
    h2 = jnp.maximum(h2, 0.0)

    # l3 -> scaled tanh perturbation (EUP handles tanh; VPU handles the rest)
    p = jnp.dot(h2.astype(jnp.bfloat16), w3_ref[...],
                preferred_element_type=jnp.float32) + b3_ref[...]
    p = (phi * max_action) * jnp.tanh(p)

    # residual add (exact f32 action) + clamp
    out = jnp.clip(p + a, -max_action, max_action)
    out_ref[...] = out.astype(out_ref.dtype)


def prepare_params(params, state_dim, *, lane=128):
    """One-time param prep:
       - split w1 by input (state rows / action rows),
       - zero-pad hidden dims to lane multiples (exactness preserved: relu(0)=0 and
         zero weight rows/cols contribute nothing),
       - cast weights to bf16; biases stay f32.
    """
    w1 = params["w1"]                      # [S+A, H1], already [in, out]
    S = state_dim
    H1 = w1.shape[1]
    H2 = params["w2"].shape[1]
    A = params["w3"].shape[1]
    H1p = _round_up(H1, lane)
    H2p = _round_up(H2, lane)

    def pad2(x, rows, cols):
        return jnp.pad(x, ((0, rows - x.shape[0]), (0, cols - x.shape[1])))

    def pad1(x, n):
        return jnp.pad(x, (0, n - x.shape[0]))

    return {
        "w1_s": pad2(w1[:S], S, H1p).astype(jnp.bfloat16),
        "w1_a": pad2(w1[S:], w1.shape[0] - S, H1p).astype(jnp.bfloat16),
        "b1": pad1(params["b1"], H1p).reshape(1, -1).astype(jnp.float32),
        "w2": pad2(params["w2"], H1p, H2p).astype(jnp.bfloat16),
        "b2": pad1(params["b2"], H2p).reshape(1, -1).astype(jnp.float32),
        "w3": pad2(params["w3"], H2p, A).astype(jnp.bfloat16),
        "b3": params["b3"].reshape(1, -1).astype(jnp.float32),
    }


def actor_forward(state, action, prepared, *, max_action, phi=0.05, block_rows=128):
    """BCQ Actor forward in a single Pallas kernel, row-tiled over the batch.

    state:    [B, state_dim]  f32
    action:   [B, action_dim] f32
    prepared: dict from prepare_params (bf16 weights, f32 biases, lane-padded hiddens)
    """
    B, S = state.shape
    A = action.shape[1]
    H1 = prepared["w1_s"].shape[1]
    H2 = prepared["w2"].shape[1]

    # Row tile: multiple of 8 (sublane), capped at block_rows; pad batch to a multiple.
    TB = min(block_rows, _round_up(B, 8))
    Bp = _round_up(B, TB)
    if Bp != B:
        state = jnp.pad(state, ((0, Bp - B), (0, 0)))
        action = jnp.pad(action, ((0, Bp - B), (0, 0)))

    grid = (Bp // TB,)

    def row_spec(cols):
        return pl.BlockSpec((TB, cols), lambda i: (i, 0))

    def fixed(shape):
        # Constant block index -> Pallas keeps the block VMEM-resident across grid steps.
        return pl.BlockSpec(shape, lambda i: (0,) * len(shape))

    kernel = functools.partial(_actor_kernel, phi=float(phi),
                               max_action=float(max_action))

    out = pl.pallas_call(
        kernel,
        out_shape=jax.ShapeDtypeStruct((Bp, A), jnp.float32),
        grid_spec=pltpu.PrefetchScalarGridSpec(
            num_scalar_prefetch=0,
            grid=grid,
            in_specs=[
                row_spec(S),                       # state tile
                row_spec(A),                       # action tile
                fixed((S, H1)),                    # w1_s (bf16)
                fixed((A, H1)),                    # w1_a (bf16)
                fixed((1, H1)),                    # b1   (f32)
                fixed((H1, H2)),                   # w2   (bf16)
                fixed((1, H2)),                    # b2   (f32)
                fixed((H2, A)),                    # w3   (bf16)
                fixed((1, A)),                     # b3   (f32)
            ],
            out_specs=row_spec(A),
        ),
        compiler_params=pltpu.CompilerParams(
            dimension_semantics=("parallel",)),    # batch axis -> megacore / 2 TCs on v7x
    )(state, action,
      prepared["w1_s"], prepared["w1_a"], prepared["b1"],
      prepared["w2"], prepared["b2"],
      prepared["w3"], prepared["b3"])

    return out[:B] if Bp != B else out


def init_params(key, state_dim, action_dim):
    """Deterministic synthetic init (PyTorch-default-like uniform)."""
    def linear_init(k, fan_in, fan_out):
        k_w, k_b = jax.random.split(k)
        bound = 1.0 / jnp.sqrt(fan_in)
        w = jax.random.uniform(k_w, (fan_in, fan_out), jnp.float32, -bound, bound)
        b = jax.random.uniform(k_b, (fan_out,), jnp.float32, -bound, bound)
        return w, b

    k1, k2, k3 = jax.random.split(key, 3)
    w1, b1 = linear_init(k1, state_dim + action_dim, 400)
    w2, b2 = linear_init(k2, 400, 300)
    w3, b3 = linear_init(k3, 300, action_dim)
    return {"w1": w1, "b1": b1, "w2": w2, "b2": b2, "w3": w3, "b3": b3}


def actor_reference(state, action, params, *, max_action, phi=0.05):
    """Pure-JAX f32 reference matching the PyTorch module."""
    x = jnp.concatenate([state, action], axis=1)
    h1 = jax.nn.relu(x @ params["w1"] + params["b1"])
    h2 = jax.nn.relu(h1 @ params["w2"] + params["b2"])
    a = phi * max_action * jnp.tanh(h2 @ params["w3"] + params["b3"])
    return jnp.clip(a + action, -max_action, max_action)


if __name__ == "__main__":
    key = jax.random.PRNGKey(0)
    k_p, k_s, k_a = jax.random.split(key, 3)

    # BCQ evaluates many perturbed candidate actions per state; fold that repeat into the
    # batch so weight DMA / launch overhead amortize (32 states x 8 candidates = 256 rows).
    n_states, n_candidates = 32, 8
    batch = n_states * n_candidates
    state_dim = 17   # MuJoCo-style state
    action_dim = 6
    max_action = 1.0
    phi = 0.05

    raw_params = init_params(k_p, state_dim, action_dim)
    prepared = prepare_params(raw_params, state_dim)

    state = jax.random.normal(k_s, (batch, state_dim), jnp.float32)
    action = jnp.tanh(jax.random.normal(k_a, (batch, action_dim), jnp.float32))

    fwd = jax.jit(functools.partial(actor_forward, max_action=max_action, phi=phi))
    out = jax.block_until_ready(fwd(state, action, prepared))

    ref = actor_reference(state, action, raw_params, max_action=max_action, phi=phi)
    assert out.shape == (batch, action_dim)
    # bf16 weights + f32 accumulate: loosen tolerance vs the pure-f32 reference
    # (tanh perturbation is scaled by phi*max_action=0.05, so abs error stays tiny).
    assert jnp.allclose(out, ref, atol=2e-2, rtol=2e-2), "mismatch vs reference"

    print("KERNEL_OK")
</pallas_src>

<mosaic_0001>
module attributes {stable_mosaic.version = 11 : i64} {
  func.func @_actor_kernel(%arg0: i32, %arg1: memref<128x17xf32, #tpu.memory_space<vmem>>, %arg2: memref<128x6xf32, #tpu.memory_space<vmem>>, %arg3: memref<17x512xbf16, #tpu.memory_space<vmem>>, %arg4: memref<6x512xbf16, #tpu.memory_space<vmem>>, %arg5: memref<1x512xf32, #tpu.memory_space<vmem>>, %arg6: memref<512x384xbf16, #tpu.memory_space<vmem>>, %arg7: memref<1x384xf32, #tpu.memory_space<vmem>>, %arg8: memref<384x6xbf16, #tpu.memory_space<vmem>>, %arg9: memref<1x6xf32, #tpu.memory_space<vmem>>, %arg10: memref<128x6xf32, #tpu.memory_space<vmem>>) attributes {dimension_semantics = [#tpu.dimension_semantics<parallel>], iteration_bounds = array<i64: 2>, scalar_prefetch = 0 : i64, scratch_operands = 0 : i64, tpu.core_type = #tpu.core_type<tc>, window_params = [{transform_indices = @transform_0, window_bounds = array<i64: 128, 17>}, {transform_indices = @transform_1, window_bounds = array<i64: 128, 6>}, {pipeline_mode = #tpu.pipeline_mode<synchronous>, transform_indices = @transform_2, window_bounds = array<i64: 17, 512>}, {pipeline_mode = #tpu.pipeline_mode<synchronous>, transform_indices = @transform_3, window_bounds = array<i64: 6, 512>}, {pipeline_mode = #tpu.pipeline_mode<synchronous>, transform_indices = @transform_4, window_bounds = array<i64: 1, 512>}, {pipeline_mode = #tpu.pipeline_mode<synchronous>, transform_indices = @transform_5, window_bounds = array<i64: 512, 384>}, {pipeline_mode = #tpu.pipeline_mode<synchronous>, transform_indices = @transform_6, window_bounds = array<i64: 1, 384>}, {pipeline_mode = #tpu.pipeline_mode<synchronous>, transform_indices = @transform_7, window_bounds = array<i64: 384, 6>}, {pipeline_mode = #tpu.pipeline_mode<synchronous>, transform_indices = @transform_8, window_bounds = array<i64: 1, 6>}, {transform_indices = @transform_9, window_bounds = array<i64: 128, 6>}]} {
    %c0 = arith.constant 0 : index
    %c0_0 = arith.constant 0 : index
    %0 = vector.load %arg1[%c0, %c0_0] : memref<128x17xf32, #tpu.memory_space<vmem>>, vector<128x17xf32>
    %c0_1 = arith.constant 0 : index
    %c0_2 = arith.constant 0 : index
    %1 = vector.load %arg2[%c0_1, %c0_2] : memref<128x6xf32, #tpu.memory_space<vmem>>, vector<128x6xf32>
    %2 = arith.truncf %0 : vector<128x17xf32> to vector<128x17xbf16>
    %c0_3 = arith.constant 0 : index
    %c0_4 = arith.constant 0 : index
    %3 = vector.load %arg3[%c0_3, %c0_4] : memref<17x512xbf16, #tpu.memory_space<vmem>>, vector<17x512xbf16>
    %cst = arith.constant dense<0.000000e+00> : vector<128x512xf32>
    %4 = tpu.matmul %2, %3, %cst {dimension_numbers = #tpu.dot_dimension_numbers<[1], [0], [0], [1], [0, 0, 1, 1], [], []>} : vector<128x17xbf16>, vector<17x512xbf16>, vector<128x512xf32> -> vector<128x512xf32>
    %5 = arith.truncf %1 : vector<128x6xf32> to vector<128x6xbf16>
    %c0_5 = arith.constant 0 : index
    %c0_6 = arith.constant 0 : index
    %6 = vector.load %arg4[%c0_5, %c0_6] : memref<6x512xbf16, #tpu.memory_space<vmem>>, vector<6x512xbf16>
    %cst_7 = arith.constant dense<0.000000e+00> : vector<128x512xf32>
    %7 = tpu.matmul %5, %6, %cst_7 {dimension_numbers = #tpu.dot_dimension_numbers<[1], [0], [0], [1], [0, 0, 1, 1], [], []>} : vector<128x6xbf16>, vector<6x512xbf16>, vector<128x512xf32> -> vector<128x512xf32>
    %8 = arith.addf %4, %7 : vector<128x512xf32>
    %c0_8 = arith.constant 0 : index
    %c0_9 = arith.constant 0 : index
    %9 = vector.load %arg5[%c0_8, %c0_9] : memref<1x512xf32, #tpu.memory_space<vmem>>, vector<1x512xf32>
    %10 = vector.broadcast %9 : vector<1x512xf32> to vector<128x512xf32>
    %11 = arith.addf %8, %10 : vector<128x512xf32>
    %cst_10 = arith.constant 0.000000e+00 : f32
    %12 = vector.broadcast %cst_10 : f32 to vector<128x512xf32>
    %13 = arith.maximumf %11, %12 : vector<128x512xf32>
    %14 = arith.truncf %13 : vector<128x512xf32> to vector<128x512xbf16>
    %c0_11 = arith.constant 0 : index
    %c0_12 = arith.constant 0 : index
    %15 = vector.load %arg6[%c0_11, %c0_12] : memref<512x384xbf16, #tpu.memory_space<vmem>>, vector<512x384xbf16>
    %cst_13 = arith.constant dense<0.000000e+00> : vector<128x384xf32>
    %16 = tpu.matmul %14, %15, %cst_13 {dimension_numbers = #tpu.dot_dimension_numbers<[1], [0], [0], [1], [0, 0, 1, 1], [], []>} : vector<128x512xbf16>, vector<512x384xbf16>, vector<128x384xf32> -> vector<128x384xf32>
    %c0_14 = arith.constant 0 : index
    %c0_15 = arith.constant 0 : index
    %17 = vector.load %arg7[%c0_14, %c0_15] : memref<1x384xf32, #tpu.memory_space<vmem>>, vector<1x384xf32>
    %18 = vector.broadcast %17 : vector<1x384xf32> to vector<128x384xf32>
    %19 = arith.addf %16, %18 : vector<128x384xf32>
    %cst_16 = arith.constant 0.000000e+00 : f32
    %20 = vector.broadcast %cst_16 : f32 to vector<128x384xf32>
    %21 = arith.maximumf %19, %20 : vector<128x384xf32>
    %22 = arith.truncf %21 : vector<128x384xf32> to vector<128x384xbf16>
    %c0_17 = arith.constant 0 : index
    %c0_18 = arith.constant 0 : index
    %23 = vector.load %arg8[%c0_17, %c0_18] : memref<384x6xbf16, #tpu.memory_space<vmem>>, vector<384x6xbf16>
    %cst_19 = arith.constant dense<0.000000e+00> : vector<128x6xf32>
    %24 = tpu.matmul %22, %23, %cst_19 {dimension_numbers = #tpu.dot_dimension_numbers<[1], [0], [0], [1], [0, 0, 1, 1], [], []>} : vector<128x384xbf16>, vector<384x6xbf16>, vector<128x6xf32> -> vector<128x6xf32>
    %c0_20 = arith.constant 0 : index
    %c0_21 = arith.constant 0 : index
    %25 = vector.load %arg9[%c0_20, %c0_21] : memref<1x6xf32, #tpu.memory_space<vmem>>, vector<1x6xf32>
    %26 = vector.broadcast %25 : vector<1x6xf32> to vector<128x6xf32>
    %27 = arith.addf %24, %26 : vector<128x6xf32>
    %28 = math.tanh %27 : vector<128x6xf32>
    %cst_22 = arith.constant 5.000000e-02 : f32
    %29 = vector.broadcast %cst_22 : f32 to vector<128x6xf32>
    %30 = arith.mulf %29, %28 : vector<128x6xf32>
    %31 = arith.addf %30, %1 : vector<128x6xf32>
    %cst_23 = arith.constant -1.000000e+00 : f32
    %cst_24 = arith.constant 1.000000e+00 : f32
    %32 = vector.broadcast %cst_23 : f32 to vector<128x6xf32>
    %33 = arith.maximumf %32, %31 : vector<128x6xf32>
    %34 = vector.broadcast %cst_24 : f32 to vector<128x6xf32>
    %35 = arith.minimumf %34, %33 : vector<128x6xf32>
    %c0_25 = arith.constant 0 : index
    %c0_26 = arith.constant 0 : index
    %36 = vector.load %arg10[%c0_25, %c0_26] : memref<128x6xf32, #tpu.memory_space<vmem>>, vector<128x6xf32>
    tpu.vector_store %arg10[%c0_25, %c0_26], %35 {strides = array<i32>} : memref<128x6xf32, #tpu.memory_space<vmem>>, vector<128x6xf32>,
    return
  }
  func.func @transform_0(%arg0: i32) -> (i32, i32) {
    %c0_i32 = arith.constant 0 : i32
    %c0_i32_0 = arith.constant 0 : i32
    return %arg0, %c0_i32 : i32, i32
  }
  func.func @transform_1(%arg0: i32) -> (i32, i32) {
    %c0_i32 = arith.constant 0 : i32
    %c0_i32_0 = arith.constant 0 : i32
    return %arg0, %c0_i32 : i32, i32
  }
  func.func @transform_2(%arg0: i32) -> (i32, i32) {
    %c0_i32 = arith.constant 0 : i32
    %c0_i32_0 = arith.constant 0 : i32
    %c0_i32_1 = arith.constant 0 : i32
    return %c0_i32, %c0_i32_0 : i32, i32
  }
  func.func @transform_3(%arg0: i32) -> (i32, i32) {
    %c0_i32 = arith.constant 0 : i32
    %c0_i32_0 = arith.constant 0 : i32
    %c0_i32_1 = arith.constant 0 : i32
    return %c0_i32, %c0_i32_0 : i32, i32
  }
  func.func @transform_4(%arg0: i32) -> (i32, i32) {
    %c0_i32 = arith.constant 0 : i32
    %c0_i32_0 = arith.constant 0 : i32
    %c0_i32_1 = arith.constant 0 : i32
    return %c0_i32, %c0_i32_0 : i32, i32
  }
  func.func @transform_5(%arg0: i32) -> (i32, i32) {
    %c0_i32 = arith.constant 0 : i32
    %c0_i32_0 = arith.constant 0 : i32
    %c0_i32_1 = arith.constant 0 : i32
    return %c0_i32, %c0_i32_0 : i32, i32
  }
  func.func @transform_6(%arg0: i32) -> (i32, i32) {
    %c0_i32 = arith.constant 0 : i32
    %c0_i32_0 = arith.constant 0 : i32
    %c0_i32_1 = arith.constant 0 : i32
    return %c0_i32, %c0_i32_0 : i32, i32
  }
  func.func @transform_7(%arg0: i32) -> (i32, i32) {
    %c0_i32 = arith.constant 0 : i32
    %c0_i32_0 = arith.constant 0 : i32
    %c0_i32_1 = arith.constant 0 : i32
    return %c0_i32, %c0_i32_0 : i32, i32
  }
  func.func @transform_8(%arg0: i32) -> (i32, i32) {
    %c0_i32 = arith.constant 0 : i32
    %c0_i32_0 = arith.constant 0 : i32
    %c0_i32_1 = arith.constant 0 : i32
    return %c0_i32, %c0_i32_0 : i32, i32
  }
  func.func @transform_9(%arg0: i32) -> (i32, i32) {
    %c0_i32 = arith.constant 0 : i32
    %c0_i32_0 = arith.constant 0 : i32
    return %arg0, %c0_i32 : i32, i32
  }
}

</mosaic_0001>

<bundles_post_ra>
// kernel: actor_forward.1
= control target key start
LH: loop header
LB: loop body
LE: loop exit
PB: predicated region body
PF: predicated region fallthrough
CT: control target
= control target key end

     0   :  { %14 = vsyncpa [#allocation3], 0  ;;  %s3798_s30 = smov 0   ;;  %s4694_s0 = inlined_call_operand.vmem [shape: f32[256,17], index: 0, kind: input, shape index: {}]   ;;  %s4695_s1 = inlined_call_operand.vmem [shape: f32[256,6], index: 1, kind: input, shape index: {}]   ;;  %s4696_s2 = inlined_call_operand.hbm [shape: bf16[17,512], index: 2, kind: input, shape index: {}]   ;;  %s4697_s3 = inlined_call_operand.vmem [shape: bf16[6,512], index: 3, kind: input, shape index: {}]   ;;  %s4698_s4 = inlined_call_operand.vmem [shape: f32[1,512], index: 4, kind: input, shape index: {}]   ;;  %s4699_s5 = inlined_call_operand.vmem [shape: bf16[512,384], index: 5, kind: input, shape index: {}]   ;;  %s4700_s6 = inlined_call_operand.vmem [shape: f32[1,384], index: 6, kind: input, shape index: {}]   ;;  %s4701_s7 = inlined_call_operand.vmem [shape: bf16[384,6], index: 7, kind: input, shape index: {}]   ;;  %s4702_s8 = inlined_call_operand.vmem [shape: f32[1,6], index: 8, kind: input, shape index: {}]   ;;  %s4703_s9 = inlined_call_operand.vmem [shape: f32[256,6], index: 9, kind: output, shape index: {}]  }
   0x1 LB: > { %s2900_s10 = sadd.s32 4294967295, %s3742_s30   ;;  %p2902_p0 = scmp.ge.s32.totalorder %s3742_s30, 1  ;;  %s3742_s30 = sphi %s3798_s30, %s20_s30  }
   0x2   : > { %p250_p1 = scmp.lt.s32.totalorder %s3742_s30, 3  ;;  %s3744_s11 = smov [#allocation2]  }
   0x3   : > { %s262_s12 = sshll.u32 %s3744_s11, 4  ;;  %p3812_p3 = scmp.eq.s32.totalorder %s2900_s10, 0  ;;  %s263_s12 = int_to_ptr.vmem [resolvable:$true] %s262_s12 }
   0x4   : > { %p3806_p2 = pnand %p2902_p0, %p250_p1  ;;  %s3704_s18 = scalar_lea.hbm %s4696_s2, 768 }
   0x5   : > { %s4708_s14 = scalar_select %p3812_p3, 1, 0 }
   0x6   : > { %s4707_s13 = scalar_select %p3806_p2, 1, 0 }
   0x7   : > { %p3472_p4 = pneg %p3806_p2  ;;  %p3705_p6 = scmp.ne.s32.totalorder %s4696_s2, %s3704_s18 }
   0x8   : > { %p3711_p10 = scmp.lt.u32.totalorder %s3704_s18, %s4696_s2 }
   0x9   : > { %p3820_p5 = pnand %p3812_p3, %p3472_p4 }
   0xb   : > { %p3706_p7 = pneg %p3820_p5 }
   0xd   : > { %p3707_p8 = pnand %p3706_p7, %p3705_p6 }
   0xf   : > { %p3708_p9 = pneg %p3707_p8 }
  0x11   : > { %p3713_p11 = pnand %p3711_p10, %p3708_p9 }
  0x13   : > { %3716 = shalt.err (!%p3713_p11)
}
  0x14   : > { %s3717_s23 = scalar_lea.vmem %s263_s12, 768  ;;  %p3725_p1 = scmp.lt.s32.totalorder %s263_s12, %s263_s12 }
  0x15   : > { %p3718_p12 = scmp.ne.s32.totalorder %s263_s12, %s3717_s23  ;;  %p3726_p4 = scmp.lt.s32.totalorder %s3717_s23, %s3717_s23 }
  0x17   : > { %p3720_p13 = pnand %p3718_p12, %p3706_p7  ;;  %p3727_p3 = por %p3726_p4, %p3725_p1 }
  0x19   : > { %p3721_p0 = pneg %p3720_p13 }
  0x1b   : > { %p3728_p2 = pnand %p3727_p3, %p3721_p0 }
  0x1d   : > { %3731 = shalt.err (!%p3728_p2)
}
  0x1e   : > { %s3745_s24 = smov 256   ;;  %s3746_s25 = smov 16  }
  0x1f   : > { %3475 = dma.hbm_to_vmem [thread:$0]  (!%p3820_p5), %s4696_s2, 768, %s263_s12, [#allocation3], %s3745_s24, %s3745_s24, %s3746_s25  }
  0x20   : > { %p4710_p6 = scmp.ne.s32.totalorder %s4707_s13, 0 }
  0x21   : > { %p4711_p8 = scmp.ne.s32.totalorder (!%p4710_p6), %s4708_s14, 0 }
  0x22   : > { %314 = sbr.rel (%p4710_p6) target bundleno = 905 (0x389), region = 56 }
  0x29   : > { %3737 = dma.done.wait (%p4711_p8), [#allocation3], 768  }
  0x2a   : > { %3739 = vsyncadd (%p4711_p8), [#allocation3], 4294966528  ;;  %s2907_s28 = sshll.u32 %s2900_s10, 4  ;;  %v3747_v0 = vmov 0   ;;  %v428_v1 = vld [vmem:[%s4697_s3] sm:$0x77] }
  0x2b   : > { %510 = vmatprep.mubr.bf16.mxu0 %v3747_v0  ;;  %570 = vmatprep.mubr.bf16.mxu1 %v3747_v0  ;;  %p356_p2 = scmp.lt.s32.totalorder %s2907_s28, 31  ;;  %vm465_vm0 = vcmask 1042432   ;;  %v2914_v4 = vcombine.high %v428_v1, %v428_v1  ;;  %v2913_v5 = vcombine.low %v428_v1, %v428_v1  ;;  %v3494_v8 = vld [vmem:[#allocation2 + $0x4] ss:$16 sps:$4 sm:$0xff]   ;;  %vm759_vm1 = vcmask 1040384  }
  0x2c   : > { %vm440_vm2 = vcmask 48128   ;;  %v3492_v12 = vld [vmem:[#allocation2] ss:$16 sps:$4 sm:$0xff]   ;;  %v429_v13 = vld [vmem:[%s4697_s3 + $0x8] sm:$0x77]  ;;  %v761_v17 = vsel %vm759_vm1, 65535, %v3747_v0 }
  0x2d   : > { %s4713_s28 = smov (!%p356_p2, %s2907_s28), 31  ;;  %2917 = vmatprep.subr.msk.bf16.mxu0 %vm465_vm0, %v2914_v4  ;;  %3338 = vmatprep.subr.msk.bf16.mxu1 %vm465_vm0, %v2914_v4  ;;  %v467_v9 = vsel %vm465_vm0, %v2913_v5, 0  ;;  %v2916_v14 = vcombine.high %v429_v13, %v429_v13  ;;  %v2915_v15 = vcombine.low %v429_v13, %v429_v13  ;;  %v418_v16 = vld [vmem:[#allocation2 + $0x20] sm:$0x11]  ;;  %v3501_v27 = vld [vmem:[#allocation2 + $0xc] ss:$16 sps:$4 sm:$0xff]  }
  0x2e   : > { %s3850_s29 = sshll.u32 %s4713_s28, 3  ;;  %479 = vmatpush1.bf16.msra.mxu0 %v467_v9  ;;  %3339 = vmatpush1.bf16.msra.mxu1 %v467_v9  ;;  %v2939_v22 = vcombine.low %v418_v16, %v418_v16  ;;  %v2940_v23 = vcombine.high %v418_v16, %v418_v16  ;;  %v419_v31 = vld [vmem:[#allocation2 + $0x28] sm:$0x11]  ;;  %v3506_v32 = vld [vmem:[%s4699_s5 + $0x4] ss:$12 sps:$4 sm:$0xff]   ;;  %vm734_vm3 = vcmask 138240  }
  0x2f   : > { %s3856_s13 = scalar_lea.vmem %s4695_s1, %s3850_s29  ;;  %774 = vmatprep.subr.bf16.mxu0 %v3494_v8  ;;  %v473_v21 = vsel %vm465_vm0, %v2915_v15, 0  ;;  %2926 = vmatprep.subr.msk.bf16.mxu1 %vm465_vm0, %v2916_v14  ;;  %v2942_v34 = vcombine.high %v419_v31, %v419_v31  ;;  %v3499_v36 = vld [vmem:[#allocation2 + $0x8] ss:$16 sps:$4 sm:$0xff]   ;;  %v2941_v37 = vcombine.low %v419_v31, %v419_v31  ;;  %s3922_s23 = scalar_lea.vmem %s4694_s0, %s3850_s29  ;;  %v3504_v53 = vld [vmem:[%s4699_s5] ss:$12 sps:$4 sm:$0xff]  }
  0x30   : > { %v390_v2 = vld [vmem:[%s3856_s13] sm:$0xff]  ;;  %v391_v3 = vld [vmem:[%s3856_s13 + $0x8] sm:$0xff]  ;;  %v392_v18 = vld [vmem:[%s3856_s13 + $0x10] sm:$0xff]  ;;  %v766_v25 = vand.u32 %v2940_v23, %v761_v17  ;;  %v763_v26 = vand.u32 %v2939_v22, %v761_v17  ;;  %s4631_s19 = scalar_lea.vmem %s4703_s9, %s3850_s29 }
  0x31   : > { %v402_v6 = vld [vmem:[%s3856_s13 + $0x60] sm:$0xff]  ;;  %v403_v7 = vld [vmem:[%s3856_s13 + $0x68] sm:$0xff]  ;;  %v420_v10 = vpack.c.bf16 %v391_v3, %v390_v2  ;;  %v393_v19 = vld [vmem:[%s3856_s13 + $0x18] sm:$0xff]  ;;  %v772_v38 = vand.u32 %v2942_v34, %v761_v17  ;;  %v769_v41 = vand.u32 %v2941_v37, %v761_v17 }
  0x32   : > { %v3868_v11 = vpack.c.bf16 %v403_v7, %v402_v6  ;;  %v404_v20 = vld [vmem:[%s3856_s13 + $0x70] sm:$0xff]  ;;  %v405_v24 = vld [vmem:[%s3856_s13 + $0x78] sm:$0xff]  ;;  %v421_v28 = vpack.c.bf16 %v393_v19, %v392_v18  ;;  %v394_v30 = vld [vmem:[%s3856_s13 + $0x20] sm:$0xff] }
  0x33   : > { %2918 = vmatmul.mubr.msk.bf16.vlgmr.msra.gmra.mrb[0].mxu0 %vm440_vm2, %v420_v10  ;;  %v3885_v29 = vpack.c.bf16 %v405_v24, %v404_v20  ;;  %v395_v33 = vld [vmem:[%s3856_s13 + $0x28] sm:$0xff]  ;;  %v396_v39 = vld [vmem:[%s3856_s13 + $0x30] sm:$0xff]  ;;  %v397_v40 = vld [vmem:[%s3856_s13 + $0x38] sm:$0xff] }
  0x34   : > { %2924 = vmatmul.mubr.msk.bf16.vlgmr.msra.gmra.mrb[0].mxu1 %vm440_vm2, %v3868_v11  ;;  %775 = vmatpush1.bf16.msra.mxu0 %v3492_v12  ;;  %v422_v35 = vpack.c.bf16 %v395_v33, %v394_v30  ;;  %v3510_v42 = vld [vmem:[%s4699_s5 + $0xc8] ss:$12 sps:$4 sm:$0xff]   ;;  %v423_v43 = vpack.c.bf16 %v397_v40, %v396_v39  ;;  %v398_v44 = vld [vmem:[%s3856_s13 + $0x40] sm:$0xff]  ;;  %v401_v48 = vld [vmem:[%s3856_s13 + $0x58] sm:$0xff] }
  0x35   : > { %520 = vmatprep.mubr.bf16.mxu0 %v3747_v0  ;;  %580 = vmatprep.mubr.bf16.mxu1 %v3747_v0  ;;  %v399_v45 = vld [vmem:[%s3856_s13 + $0x48] sm:$0xff]  ;;  %v400_v47 = vld [vmem:[%s3856_s13 + $0x50] sm:$0xff]  ;;  %v374_v50 = vld [vmem:[%s3922_s23] sm:$0xff] }
  0x36   : > { %592 = vmatpush1.bf16.msra.mxu1 %v473_v21  ;;  %776 = vmatprep.subr.bf16.mxu0 %v766_v25  ;;  %v424_v46 = vpack.c.bf16 %v399_v45, %v398_v44  ;;  %v425_v49 = vpack.c.bf16 %v401_v48, %v400_v47  ;;  %v375_v51 = vld [vmem:[%s3922_s23 + $0x8] sm:$0xff]  ;;  %v376_v55 = vld [vmem:[%s3922_s23 + $0x10] sm:$0xff]  ;;  %v377_v56 = vld [vmem:[%s3922_s23 + $0x18] sm:$0xff] }
  0x37   : > { %887 = vmatprep.subr.bf16.mxu1 %v3501_v27  ;;  %v3930_v52 = vpack.c.bf16 %v375_v51, %v374_v50  ;;  %v3509_v54 = vld [vmem:[%s4699_s5 + $0x1c] ss:$12 sps:$4 sm:$0xff]   ;;  %v3507_v57 = vld [vmem:[%s4699_s5 + $0x18] ss:$12 sps:$4 sm:$0xff]   ;;  %v3514_v58 = vld [vmem:[%s4699_s5 + $0x34] ss:$12 sps:$4 sm:$0xff]   ;;  %v3951_v59 = vpack.c.bf16 %v377_v56, %v376_v55 }
  0x38   : > { %777 = vmatpush1.bf16.msra.mxu0 %v763_v26  ;;  %v3512_v60 = vld [vmem:[%s4699_s5 + $0x30] ss:$12 sps:$4 sm:$0xff]   ;;  %v3517_v61 = vld [vmem:[%s4699_s5 + $0x4c] ss:$12 sps:$4 sm:$0xff]   ;;  %v378_v62 = vld [vmem:[%s3922_s23 + $0x20] sm:$0xff] }
  0x39   : > { %1839 = vmatprep.subr.bf16.mxu0 %v3506_v32  ;;  %v379_v63 = vld [vmem:[%s3922_s23 + $0x28] sm:$0xff]  ;;  %v3522_v2 = vld [vmem:[%s4699_s5 + $0x64] ss:$12 sps:$4 sm:$0xff]   ;;  %v381_v7 = vld [vmem:[%s3922_s23 + $0x38] sm:$0xff] }
  0x3a   : > { %v3515_v1 = vld [vmem:[%s4699_s5 + $0x48] ss:$12 sps:$4 sm:$0xff]   ;;  %v3972_v3 = vpack.c.bf16 %v379_v63, %v378_v62  ;;  %v3520_v4 = vld [vmem:[%s4699_s5 + $0x60] ss:$12 sps:$4 sm:$0xff]   ;;  %v3523_v8 = vld [vmem:[%s4699_s5 + $0x78] ss:$12 sps:$4 sm:$0xff]  }
  0x3b   : > { %2919 = vmatmul.mubr.msk.bf16.gmra.mrb[4].mxu0 %vm440_vm2, %v421_v28  ;;  %v3525_v5 = vld [vmem:[%s4699_s5 + $0x7c] ss:$12 sps:$4 sm:$0xff]   ;;  %v380_v6 = vld [vmem:[%s3922_s23 + $0x30] sm:$0xff]  ;;  %v3533_v12 = vld [vmem:[%s4699_s5 + $0xac] ss:$12 sps:$4 sm:$0xff]  }
  0x3c   : > { %2925 = vmatmul.mubr.msk.bf16.gmra.mrb[4].mxu1 %vm440_vm2, %v3885_v29  ;;  %530 = vmatprep.mubr.bf16.mxu0 %v3747_v0  ;;  %v3530_v9 = vld [vmem:[%s4699_s5 + $0x94] ss:$12 sps:$4 sm:$0xff]   ;;  %v383_v14 = vld [vmem:[%s3922_s23 + $0x48] sm:$0xff]  ;;  %v3538_v16 = vld [vmem:[%s4699_s5 + $0xc4] ss:$12 sps:$4 sm:$0xff]  }
  0x3d   : > { %623 = vmatprep.mubr.bf16.mxu1 %v3747_v0  ;;  %v382_v13 = vld [vmem:[%s3922_s23 + $0x40] sm:$0xff]  ;;  %v3531_v15 = vld [vmem:[%s4699_s5 + $0xa8] ss:$12 sps:$4 sm:$0xff]   ;;  %v385_v23 = vld [vmem:[%s3922_s23 + $0x58] sm:$0xff] }
  0x3e   : > { %v4016_v17 = vpack.c.bf16 %v383_v14, %v382_v13  ;;  %v3511_v18 = vld [vmem:[%s4699_s5 + $0x8] ss:$12 sps:$4 sm:$0xff]   ;;  %v3536_v19 = vld [vmem:[%s4699_s5 + $0xc0] ss:$12 sps:$4 sm:$0xff]   ;;  %v3539_v25 = vld [vmem:[%s4699_s5 + $0xd8] ss:$12 sps:$4 sm:$0xff]  }
  0x3f   : > { %v3518_v20 = vld [vmem:[%s4699_s5 + $0xe0] ss:$12 sps:$4 sm:$0xff]   ;;  %v3541_v21 = vld [vmem:[%s4699_s5 + $0xdc] ss:$12 sps:$4 sm:$0xff]   ;;  %v384_v22 = vld [vmem:[%s3922_s23 + $0x50] sm:$0xff] }
  0x40   : > { %v3519_v24 = vld [vmem:[%s4699_s5 + $0x20] ss:$12 sps:$4 sm:$0xff]   ;;  %v3526_v26 = vld [vmem:[%s4699_s5 + $0xf8] ss:$12 sps:$4 sm:$0xff]   ;;  %v411_v27 = vpack.c.bf16 %v385_v23, %v384_v22  ;;  %v3534_v30 = vld [vmem:[%s4699_s5 + $0x110] ss:$12 sps:$4 sm:$0xff]  }
  0x41   : > { %v3544_v31 = vld [vmem:[%s4699_s5 + $0xf0] ss:$12 sps:$4 sm:$0xff]   ;;  %v3549_v32 = vld [vmem:[%s4699_s5 + $0x10c] ss:$12 sps:$4 sm:$0xff]   ;;  %v386_v33 = vld [vmem:[%s3922_s23 + $0x60] sm:$0xff] }
  0x42   : > { %v387_v34 = vld [vmem:[%s3922_s23 + $0x68] sm:$0xff]  ;;  %v3554_v40 = vld [vmem:[%s4699_s5 + $0x124] ss:$12 sps:$4 sm:$0xff]   ;;  %v389_v45 = vld [vmem:[%s3922_s23 + $0x78] sm:$0xff] }
  0x43   : > { %2920 = vmatmul.mubr.msk.bf16.gmra.mrb[8].mxu0 %vm440_vm2, %v422_v35  ;;  %v3547_v37 = vld [vmem:[%s4699_s5 + $0x108] ss:$12 sps:$4 sm:$0xff]   ;;  %v3555_v47 = vld [vmem:[%s4699_s5 + $0x138] ss:$12 sps:$4 sm:$0xff]   ;;  %v3567_v55 = vld [vmem:[%s4699_s5 + $0xb0] ss:$12 sps:$4 sm:$0xff]  }
  0x44   : > { %2927 = vmatmul.mubr.msk.bf16.vlgmr.msra.gmra.mrb[8].mxu1 %vm440_vm2, %v420_v10  ;;  %540 = vmatprep.mubr.bf16.mxu0 %v3747_v0  ;;  %v3994_v10 = vpack.c.bf16 %v381_v7, %v380_v6  ;;  %v3543_v39 = vld [vmem:[%s4699_s5 + $0x68] ss:$12 sps:$4 sm:$0xff]   ;;  %v3559_v51 = vld [vmem:[%s4699_s5 + $0x98] ss:$12 sps:$4 sm:$0xff]   ;;  %v4170_v6 = vld [vmem:[%s4698_s4] sm:$0xf] }
  0x45   : > { %633 = vmatprep.mubr.bf16.mxu1 %v3747_v0  ;;  %888 = vmatpush1.bf16.msra.mxu1 %v3499_v36  ;;  %v3542_v36 = vld [vmem:[%s4699_s5 + $0x128] ss:$12 sps:$4 sm:$0xff]   ;;  %v3570_v56 = vld [vmem:[%s4699_s5 + $0x184] ss:$12 sps:$4 sm:$0xff]  }
  0x46   : > { %889 = vmatprep.subr.bf16.mxu1 %v772_v38  ;;  %v412_v38 = vpack.c.bf16 %v387_v34, %v386_v33  ;;  %v388_v44 = vld [vmem:[%s3922_s23 + $0x70] sm:$0xff] }
  0x47   : > { %v413_v48 = vpack.c.bf16 %v389_v45, %v388_v44  ;;  %v3562_v50 = vld [vmem:[%s4699_s5 + $0x154] ss:$12 sps:$4 sm:$0xff]  }
  0x49   : > { %890 = vmatpush1.bf16.msra.mxu1 %v769_v41  ;;  %v3550_v41 = vld [vmem:[%s4699_s5 + $0x140] ss:$12 sps:$4 sm:$0xff]  }
  0x4a   : > { %3098 = vmatprep.subr.bf16.mxu1 %v3510_v42  ;;  %v3552_v42 = vld [vmem:[%s4699_s5 + $0x120] ss:$12 sps:$4 sm:$0xff]  }
  0x4b   : > { %2921 = vmatmul.mubr.msk.bf16.gmra.mrb[12].mxu0 %vm440_vm2, %v423_v43 }
  0x4c   : > { %2928 = vmatmul.mubr.msk.bf16.gmra.mrb[12].mxu1 %vm440_vm2, %v421_v28  ;;  %550 = vmatprep.mubr.bf16.mxu0 %v3747_v0  ;;  %v3527_v28 = vld [vmem:[%s4699_s5 + $0x38] ss:$12 sps:$4 sm:$0xff]  }
  0x4d   : > { %643 = vmatprep.mubr.bf16.mxu1 %v3747_v0 }
  0x53   : > { %2922 = vmatmul.mubr.msk.bf16.gmra.mrb[16].mxu0 %vm440_vm2, %v424_v46 }
  0x54   : > { %2929 = vmatmul.mubr.msk.bf16.gmra.mrb[16].mxu1 %vm440_vm2, %v422_v35  ;;  %560 = vmatprep.mubr.bf16.mxu0 %v3747_v0  ;;  %v3535_v35 = vld [vmem:[%s4699_s5 + $0x50] ss:$12 sps:$4 sm:$0xff]  }
  0x55   : > { %653 = vmatprep.mubr.bf16.mxu1 %v3747_v0 }
  0x5b   : > { %2923 = vmatmul.mubr.msk.bf16.gmra.mrb[20].mxu0 %vm440_vm2, %v425_v49 }
  0x5c   : > { %2930 = vmatmul.mubr.msk.bf16.gmra.mrb[20].mxu1 %vm440_vm2, %v423_v43  ;;  %806 = vmatprep.mubr.bf16.mxu0 %v3747_v0  ;;  %v3557_v43 = vld [vmem:[%s4699_s5 + $0x13c] ss:$12 sps:$4 sm:$0xff]  }
  0x5d   : > { %663 = vmatprep.mubr.bf16.mxu1 %v3747_v0 }
  0x63   : > { %2943 = vmatmul.mubr.msk.bf16.vlgmr.msra.gmra.mrb[0].mxu0 %vm734_vm3, %v3930_v52 }
  0x64   : > { %2931 = vmatmul.mubr.msk.bf16.gmra.mrb[24].mxu1 %vm440_vm2, %v424_v46  ;;  %816 = vmatprep.mubr.bf16.mxu0 %v3747_v0  ;;  %v3551_v46 = vld [vmem:[%s4699_s5 + $0x80] ss:$12 sps:$4 sm:$0xff]  }
  0x65   : > { %673 = vmatprep.mubr.bf16.mxu1 %v3747_v0  ;;  %1840 = vmatpush1.bf16.msra.mxu0 %v3504_v53  ;;  %v3566_v53 = vld [vmem:[%s4699_s5 + $0x170] ss:$12 sps:$4 sm:$0xff]  }
  0x66   : > { %1841 = vmatprep.subr.bf16.mxu0 %v3509_v54  ;;  %v3563_v54 = vld [vmem:[%s4699_s5 + $0x168] ss:$12 sps:$4 sm:$0xff]  }
  0x69   : > { %1842 = vmatpush1.bf16.msra.mxu0 %v3507_v57  ;;  %v3571_v57 = vld [vmem:[%s4699_s5 + $0x248] ss:$12 sps:$4 sm:$0xff]  }
  0x6a   : > { %1843 = vmatprep.subr.bf16.mxu0 %v3514_v58 }
  0x6b   : > { %2944 = vmatmul.mubr.msk.bf16.gmra.mrb[4].mxu0 %vm734_vm3, %v3951_v59 }
  0x6c   : > { %2932 = vmatmul.mubr.msk.bf16.gmra.mrb[28].mxu1 %vm440_vm2, %v425_v49  ;;  %826 = vmatprep.mubr.bf16.mxu0 %v3747_v0  ;;  %v3558_v49 = vld [vmem:[%s4699_s5 + $0x158] ss:$12 sps:$4 sm:$0xff]  }
  0x6d   : > { %683 = vmatprep.mubr.bf16.mxu1 %v3747_v0  ;;  %1844 = vmatpush1.bf16.msra.mxu0 %v3512_v60 }
  0x6e   : > { %1845 = vmatprep.subr.bf16.mxu0 %v3517_v61 }
  0x71   : > { %1846 = vmatpush1.bf16.msra.mxu0 %v3515_v1 }
  0x72   : > { %1847 = vmatprep.subr.bf16.mxu0 %v3522_v2 }
  0x73   : > { %2945 = vmatmul.mubr.msk.bf16.gmra.mrb[8].mxu0 %vm734_vm3, %v3972_v3 }
  0x74   : > { %2933 = vmatmul.mubr.msk.bf16.gmra.mrb[32].mxu1 %vm440_vm2, %v3868_v11  ;;  %836 = vmatprep.mubr.bf16.mxu0 %v3747_v0  ;;  %v3528_v11 = vld [vmem:[%s4699_s5 + $0x90] ss:$12 sps:$4 sm:$0xff]  }
  0x75   : > { %693 = vmatprep.mubr.bf16.mxu1 %v3747_v0  ;;  %1848 = vmatpush1.bf16.msra.mxu0 %v3520_v4 }
  0x76   : > { %1849 = vmatprep.subr.bf16.mxu0 %v3525_v5 }
  0x79   : > { %1850 = vmatpush1.bf16.msra.mxu0 %v3523_v8 }
  0x7a   : > { %1851 = vmatprep.subr.bf16.mxu0 %v3530_v9 }
  0x7b   : > { %2946 = vmatmul.mubr.msk.bf16.gmra.mrb[12].mxu0 %vm734_vm3, %v3994_v10 }
  0x7c   : > { %2934 = vmatmul.mubr.msk.bf16.gmra.mrb[36].mxu1 %vm440_vm2, %v3885_v29  ;;  %846 = vmatprep.mubr.bf16.mxu0 %v3747_v0  ;;  %v3546_v29 = vld [vmem:[%s4699_s5 + $0xf4] ss:$12 sps:$4 sm:$0xff]  }
  0x7d   : > { %919 = vmatprep.mubr.bf16.mxu1 %v3747_v0  ;;  %1852 = vmatpush1.bf16.msra.mxu0 %v3528_v11 }
  0x7e   : > { %1853 = vmatprep.subr.bf16.mxu0 %v3533_v12 }
  0x81   : > { %1854 = vmatpush1.bf16.msra.mxu0 %v3531_v15 }
  0x82   : > { %1855 = vmatprep.subr.bf16.mxu0 %v3538_v16 }
  0x83   : > { %2947 = vmatmul.mubr.msk.bf16.gmra.mrb[16].mxu0 %vm734_vm3, %v4016_v17 }
  0x84   : > { %2951 = vmatmul.mubr.msk.bf16.vlgmr.msra.gmra.mrb[8].mxu1 %vm734_vm3, %v3930_v52  ;;  %856 = vmatprep.mubr.bf16.mxu0 %v3747_v0  ;;  %v3560_v52 = vld [vmem:[%s4699_s5 + $0x150] ss:$12 sps:$4 sm:$0xff]  }
  0x85   : > { %929 = vmatprep.mubr.bf16.mxu1 %v3747_v0  ;;  %3099 = vmatpush3.bf16.msra.mxu1 %v3511_v18 }
  0x86   : > { %1856 = vmatpush1.bf16.msra.mxu0 %v3536_v19  ;;  %3100 = vmatprep.subr.bf16.mxu1 %v3518_v20 }
  0x87   : > { %1857 = vmatprep.subr.bf16.mxu0 %v3541_v21 }
  0x89   : > { %3101 = vmatpush3.bf16.msra.mxu1 %v3519_v24 }
  0x8a   : > { %1858 = vmatpush1.bf16.msra.mxu0 %v3539_v25  ;;  %3102 = vmatprep.subr.bf16.mxu1 %v3526_v26  ;;  %v3568_v25 = vld [vmem:[%s4699_s5 + $0x180] ss:$12 sps:$4 sm:$0xff]   ;;  %v3575_v26 = vld [vmem:[%s4699_s5 + $0x188] ss:$12 sps:$4 sm:$0xff]  }
  0x8b   : > { %2948 = vmatmul.mubr.msk.bf16.gmra.mrb[20].mxu0 %vm734_vm3, %v411_v27  ;;  %1859 = vmatprep.subr.bf16.mxu0 %v3546_v29  ;;  %v3574_v29 = vld [vmem:[%s4699_s5 + $0x19c] ss:$12 sps:$4 sm:$0xff]  }
  0x8c   : > { %2952 = vmatmul.mubr.msk.bf16.gmra.mrb[12].mxu1 %vm734_vm3, %v3951_v59  ;;  %866 = vmatprep.mubr.bf16.mxu0 %v3747_v0 }
  0x8d   : > { %939 = vmatprep.mubr.bf16.mxu1 %v3747_v0  ;;  %3103 = vmatpush3.bf16.msra.mxu1 %v3527_v28 }
  0x8e   : > { %3104 = vmatprep.subr.bf16.mxu1 %v3534_v30  ;;  %1860 = vmatpush1.bf16.msra.mxu0 %v3544_v31  ;;  %v3579_v30 = vld [vmem:[%s4699_s5 + $0x260] ss:$12 sps:$4 sm:$0xff]  }
  0x8f   : > { %1861 = vmatprep.subr.bf16.mxu0 %v3549_v32 }
  0x91   : > { %3105 = vmatpush3.bf16.msra.mxu1 %v3535_v35 }
  0x92   : > { %3106 = vmatprep.subr.bf16.mxu1 %v3542_v36  ;;  %1862 = vmatpush1.bf16.msra.mxu0 %v3547_v37  ;;  %v3572_v36 = vld [vmem:[%s4699_s5 + $0x198] ss:$12 sps:$4 sm:$0xff]   ;;  %v3583_v37 = vld [vmem:[%s4699_s5 + $0x1a0] ss:$12 sps:$4 sm:$0xff]  }
  0x93   : > { %2949 = vmatmul.mubr.msk.bf16.gmra.mrb[24].mxu0 %vm734_vm3, %v412_v38  ;;  %1863 = vmatprep.subr.bf16.mxu0 %v3554_v40  ;;  %v3578_v40 = vld [vmem:[%s4699_s5 + $0x1b4] ss:$12 sps:$4 sm:$0xff]  }
  0x94   : > { %2953 = vmatmul.mubr.msk.bf16.gmra.mrb[16].mxu1 %vm734_vm3, %v3972_v3  ;;  %876 = vmatprep.mubr.bf16.mxu0 %v3747_v0  ;;  %v1002_v3 = vlaneseq }
  0x95   : > { %949 = vmatprep.mubr.bf16.mxu1 %v3747_v0  ;;  %3107 = vmatpush3.bf16.msra.mxu1 %v3543_v39 }
  0x96   : > { %3108 = vmatprep.subr.bf16.mxu1 %v3550_v41  ;;  %1864 = vmatpush1.bf16.msra.mxu0 %v3552_v42  ;;  %v4164_v4 = vshrl.u32 %v1002_v3, 7  ;;  %v3587_v41 = vld [vmem:[%s4699_s5 + $0x278] ss:$12 sps:$4 sm:$0xff]   ;;  %v3599_v3 = vld [vmem:[%s4699_s5 + $0x1d0] ss:$12 sps:$4 sm:$0xff]  }
  0x97   : > { %1865 = vmatprep.subr.bf16.mxu0 %v3557_v43 }
  0x98   : > { %v1004_v5 = vsub.s32 0, %v4164_v4  ;;  %v1008_v7 = vsub.s32 1, %v4164_v4 }
  0x99   : > { %3109 = vmatpush3.bf16.msra.mxu1 %v3551_v46 }
  0x9a   : > { %1866 = vmatpush1.bf16.msra.mxu0 %v3555_v47  ;;  %3110 = vmatprep.subr.bf16.mxu1 %v3558_v49  ;;  %v4176_v8 = vrot.slane %v4170_v6, %v1004_v5  ;;  %v4181_v9 = vrot.slane %v4170_v6, %v1008_v7  ;;  %v3576_v47 = vld [vmem:[%s4699_s5 + $0x1b0] ss:$12 sps:$4 sm:$0xff]  }
  0x9b   : > { %2950 = vmatmul.mubr.msk.bf16.gmra.mrb[28].mxu0 %vm734_vm3, %v413_v48  ;;  %1867 = vmatprep.subr.bf16.mxu0 %v3562_v50 }
  0x9c   : > { %2954 = vmatmul.mubr.msk.bf16.gmra.mrb[20].mxu1 %vm734_vm3, %v3994_v10 }
  0x9d   : > { %959 = vmatprep.mubr.bf16.mxu1 %v3747_v0  ;;  %3111 = vmatpush3.bf16.msra.mxu1 %v3559_v51  ;;  %v3582_v51 = vld [vmem:[%s4699_s5 + $0x1cc] ss:$12 sps:$4 sm:$0xff]  }
  0x9e   : > { %1868 = vmatpush1.bf16.msra.mxu0 %v3560_v52  ;;  %3112 = vmatprep.subr.bf16.mxu1 %v3566_v53  ;;  %v3595_v52 = vld [vmem:[%s4699_s5 + $0x290] ss:$12 sps:$4 sm:$0xff]  }
  0xa1   : > { %3113 = vmatpush3.bf16.msra.mxu1 %v3567_v55 }
  0xa2   : > { %3162 = vmatprep.subr.bf16.mxu1 %v3571_v57  ;;  %v3580_v57 = vld [vmem:[%s4699_s5 + $0x1c8] ss:$12 sps:$4 sm:$0xff]  }
  0xa4   : > { %2955 = vmatmul.mubr.msk.bf16.gmra.mrb[24].mxu1 %vm734_vm3, %v4016_v17 }
  0xa5   : > { %969 = vmatprep.mubr.bf16.mxu1 %v3747_v0 }
  0xac   : > { %2956 = vmatmul.mubr.msk.bf16.gmra.mrb[28].mxu1 %vm734_vm3, %v411_v27 }
  0xad   : > { %979 = vmatprep.mubr.bf16.mxu1 %v3747_v0 }
  0xb4   : > { %2957 = vmatmul.mubr.msk.bf16.gmra.mrb[32].mxu1 %vm734_vm3, %v412_v38 }
  0xb5   : > { %989 = vmatprep.mubr.bf16.mxu1 %v3747_v0  ;;  %v3565_v0 = vld [vmem:[%s4699_s5 + $0x16c] ss:$12 sps:$4 sm:$0xff]  }
  0xb6   : > { %1869 = vmatprep.subr.bf16.mxu0 %v3565_v0 }
  0xb7   : > { %1870 = vmatpush1.bf16.msra.mxu0 %v3563_v54 }
  0xb8   : > { %1952 = vmatprep.subr.bf16.mxu0 %v3570_v56 }
  0xbc   : > { %2958 = vmatmul.mubr.msk.bf16.gmra.mrb[36].mxu1 %vm734_vm3, %v413_v48  ;;  %v3591_v48 = vld [vmem:[%s4699_s5 + $0x1b8] ss:$12 sps:$4 sm:$0xff]  }
 0x107   : > { %v4148_v58 = vpop.f32.mrb[0].mxu1 }
 0x108   : > { %v4150_v59 = vpop.f32.mrb[1].mxu1 }
 0x109   : > { %v4152_v60 = vpop.f32.mrb[2].mxu1 }
 0x10a   : > { %v4154_v61 = vpop.f32.mrb[3].mxu1 }
 0x10f   : > { %v4156_v62 = vpop.f32.mrb[4].mxu1 }
 0x110   : > { %v4158_v63 = vpop.f32.mrb[5].mxu1 }
 0x111   : > { %v4160_v1 = vpop.f32.mrb[6].mxu1 }
 0x112   : > { %v4162_v2 = vpop.f32.mrb[7].mxu1 }
 0x136   : > { %v808_v10 = vpop.f32.mrb[0].mxu0 }
 0x137   : > { %v1022_v11 = vadd.f32 %v4176_v8, %v808_v10  ;;  %v810_v12 = vpop.f32.mrb[1].mxu0 }
 0x138   : > { %v1023_v13 = vadd.f32 %v4181_v9, %v810_v12  ;;  %v812_v14 = vpop.f32.mrb[2].mxu0  ;;  %v3586_v12 = vld [vmem:[%s4699_s5 + $0x1e4] ss:$12 sps:$4 sm:$0xff]  }
 0x139   : > { %v1026_v15 = vadd.f32 %v4176_v8, %v812_v14  ;;  %v814_v16 = vpop.f32.mrb[3].mxu0  ;;  %v1086_v18 = vmax.f32 %v1022_v11, 0.0 }
 0x13a   : > { %v1027_v17 = vadd.f32 %v4181_v9, %v814_v16  ;;  %v1087_v20 = vmax.f32 %v1023_v13, 0.0  ;;  %v3603_v13 = vld [vmem:[%s4699_s5 + $0x2a8] ss:$12 sps:$4 sm:$0xff]  }
 0x13b   : > { %v1090_v19 = vmax.f32 %v1026_v15, 0.0 }
 0x13c   : > { %v1091_v21 = vmax.f32 %v1027_v17, 0.0 }
 0x13d   : > { %v1150_v22 = vpack.c.bf16 %v1090_v19, %v1086_v18  ;;  %v3584_v19 = vld [vmem:[%s4699_s5 + $0x1e0] ss:$12 sps:$4 sm:$0xff]  }
 0x13e   : > { %v1151_v23 = vpack.c.bf16 %v1091_v21, %v1087_v20  ;;  %v818_v24 = vpop.f32.mrb[4].mxu0  ;;  %v3607_v20 = vld [vmem:[%s4699_s5 + $0x1e8] ss:$12 sps:$4 sm:$0xff]  }
 0x13f   : > { %v1030_v27 = vadd.f32 %v4176_v8, %v818_v24  ;;  %v820_v28 = vpop.f32.mrb[5].mxu0  ;;  %v3590_v24 = vld [vmem:[%s4699_s5 + $0x1fc] ss:$12 sps:$4 sm:$0xff]  }
 0x140   : > { %v1031_v31 = vadd.f32 %v4181_v9, %v820_v28  ;;  %v822_v32 = vpop.f32.mrb[6].mxu0  ;;  %1871 = vmatprep.mubr.bf16.mxu0 %v1151_v23  ;;  %2097 = vmatprep.mubr.bf16.mxu1 %v1151_v23  ;;  %v1012_v23 = vsub.s32 2, %v4164_v4  ;;  %v1016_v28 = vsub.s32 3, %v4164_v4 }
 0x141   : > { %v1034_v33 = vadd.f32 %v4176_v8, %v822_v32  ;;  %v824_v34 = vpop.f32.mrb[7].mxu0  ;;  %1872 = vmatmul.mubr.bf16.vlgmr.msra.gmra.mrb[32].mxu0 %v1150_v22  ;;  %2098 = vmatmul.mubr.bf16.vlgmr.msra.gmra.mrb[40].mxu1 %v1150_v22  ;;  %v1094_v38 = vmax.f32 %v1030_v27, 0.0  ;;  %v3588_v32 = vld [vmem:[%s4699_s5 + $0x1f8] ss:$12 sps:$4 sm:$0xff]  }
 0x142   : > { %v1035_v35 = vadd.f32 %v4181_v9, %v824_v34  ;;  %1953 = vmatpush1.bf16.msra.mxu0 %v3568_v25  ;;  %3163 = vmatpush3.bf16.msra.mxu1 %v3575_v26  ;;  %v1095_v42 = vmax.f32 %v1031_v31, 0.0  ;;  %v3611_v25 = vld [vmem:[%s4699_s5 + $0x2c0] ss:$12 sps:$4 sm:$0xff]  }
 0x143   : > { %v1098_v39 = vmax.f32 %v1034_v33, 0.0  ;;  %1954 = vmatprep.subr.bf16.mxu0 %v3574_v29  ;;  %3164 = vmatprep.subr.bf16.mxu1 %v3579_v30  ;;  %v3615_v33 = vld [vmem:[%s4699_s5 + $0x200] ss:$12 sps:$4 sm:$0xff]  }
 0x144   : > { %v1099_v43 = vmax.f32 %v1035_v35, 0.0 }
 0x145   : > { %v1154_v44 = vpack.c.bf16 %v1098_v39, %v1094_v38  ;;  %v3619_v38 = vld [vmem:[%s4699_s5 + $0x2d8] ss:$12 sps:$4 sm:$0xff]  }
 0x146   : > { %v1155_v45 = vpack.c.bf16 %v1099_v43, %v1095_v42  ;;  %v828_v46 = vpop.f32.mrb[8].mxu0  ;;  %1955 = vmatpush1.bf16.msra.mxu0 %v3572_v36  ;;  %3165 = vmatpush3.bf16.msra.mxu1 %v3583_v37  ;;  %v4270_v36 = vrot.slane %v4170_v6, %v1012_v23  ;;  %v3594_v37 = vld [vmem:[%s4699_s5 + $0x214] ss:$12 sps:$4 sm:$0xff]  }
 0x147   : > { %v1038_v49 = vadd.f32 %v4176_v8, %v828_v46  ;;  %v830_v50 = vpop.f32.mrb[9].mxu0  ;;  %1956 = vmatprep.subr.bf16.mxu0 %v3578_v40  ;;  %3166 = vmatprep.subr.bf16.mxu1 %v3587_v41  ;;  %v4279_v41 = vrot.slane %v4170_v6, %v1016_v28  ;;  %v3592_v46 = vld [vmem:[%s4699_s5 + $0x210] ss:$12 sps:$4 sm:$0xff]  }
 0x148   : > { %v1039_v0 = vadd.f32 %v4181_v9, %v830_v50  ;;  %v832_v53 = vpop.f32.mrb[10].mxu0  ;;  %1881 = vmatprep.mubr.bf16.mxu0 %v1155_v45  ;;  %2105 = vmatprep.mubr.bf16.mxu1 %v1155_v45 }
 0x149   : > { %v1042_v54 = vadd.f32 %v4176_v8, %v832_v53  ;;  %v834_v55 = vpop.f32.mrb[11].mxu0  ;;  %1882 = vmatmul.mubr.bf16.gmra.mrb[36].mxu0 %v1154_v44  ;;  %2106 = vmatmul.mubr.bf16.gmra.mrb[44].mxu1 %v1154_v44  ;;  %v1102_v10 = vmax.f32 %v1038_v49, 0.0 }
 0x14a   : > { %v1043_v56 = vadd.f32 %v4181_v9, %v834_v55  ;;  %1957 = vmatpush1.bf16.msra.mxu0 %v3576_v47  ;;  %3167 = vmatpush3.bf16.msra.mxu1 %v3591_v48  ;;  %v1103_v14 = vmax.f32 %v1039_v0, 0.0  ;;  %v3623_v47 = vld [vmem:[%s4699_s5 + $0x218] ss:$12 sps:$4 sm:$0xff]  }
 0x14b   : > { %v1106_v11 = vmax.f32 %v1042_v54, 0.0  ;;  %1958 = vmatprep.subr.bf16.mxu0 %v3582_v51  ;;  %3168 = vmatprep.subr.bf16.mxu1 %v3595_v52  ;;  %v3598_v51 = vld [vmem:[%s4699_s5 + $0x22c] ss:$12 sps:$4 sm:$0xff]   ;;  %v3627_v52 = vld [vmem:[%s4699_s5 + $0x2f0] ss:$12 sps:$4 sm:$0xff]  }
 0x14c   : > { %v1107_v15 = vmax.f32 %v1043_v56, 0.0 }
 0x14d   : > { %v1158_v16 = vpack.c.bf16 %v1106_v11, %v1102_v10 }
 0x14e   : > { %v1159_v17 = vpack.c.bf16 %v1107_v15, %v1103_v14  ;;  %v838_v18 = vpop.f32.mrb[12].mxu0  ;;  %1959 = vmatpush1.bf16.msra.mxu0 %v3580_v57  ;;  %3169 = vmatpush3.bf16.msra.mxu1 %v3599_v3  ;;  %v3631_v14 = vld [vmem:[%s4699_s5 + $0x230] ss:$12 sps:$4 sm:$0xff]  }
 0x14f   : > { %v1046_v21 = vadd.f32 %v4176_v8, %v838_v18  ;;  %v840_v22 = vpop.f32.mrb[13].mxu0  ;;  %1960 = vmatprep.subr.bf16.mxu0 %v3586_v12  ;;  %3170 = vmatprep.subr.bf16.mxu1 %v3603_v13  ;;  %v3596_v13 = vld [vmem:[%s4699_s5 + $0x228] ss:$12 sps:$4 sm:$0xff]  }
 0x150   : > { %v1047_v26 = vadd.f32 %v4181_v9, %v840_v22  ;;  %v842_v27 = vpop.f32.mrb[14].mxu0  ;;  %1891 = vmatprep.mubr.bf16.mxu0 %v1159_v17  ;;  %2113 = vmatprep.mubr.bf16.mxu1 %v1159_v17 }
 0x151   : > { %v1050_v29 = vadd.f32 %v4176_v8, %v842_v27  ;;  %v844_v30 = vpop.f32.mrb[15].mxu0  ;;  %1892 = vmatmul.mubr.bf16.gmra.mrb[40].mxu0 %v1158_v16  ;;  %2114 = vmatmul.mubr.bf16.gmra.mrb[48].mxu1 %v1158_v16  ;;  %v1110_v34 = vmax.f32 %v1046_v21, 0.0 }
 0x152   : > { %v1051_v31 = vadd.f32 %v4181_v9, %v844_v30  ;;  %1961 = vmatpush1.bf16.msra.mxu0 %v3584_v19  ;;  %3171 = vmatpush3.bf16.msra.mxu1 %v3607_v20  ;;  %v1111_v39 = vmax.f32 %v1047_v26, 0.0  ;;  %v3602_v19 = vld [vmem:[%s4699_s5 + $0x244] ss:$12 sps:$4 sm:$0xff]  }
 0x153   : > { %v1114_v35 = vmax.f32 %v1050_v29, 0.0  ;;  %1962 = vmatprep.subr.bf16.mxu0 %v3590_v24  ;;  %3172 = vmatprep.subr.bf16.mxu1 %v3611_v25 }
 0x154   : > { %v1115_v40 = vmax.f32 %v1051_v31, 0.0  ;;  %v3600_v31 = vld [vmem:[%s4699_s5 + $0x240] ss:$12 sps:$4 sm:$0xff]  }
 0x155   : > { %v1162_v42 = vpack.c.bf16 %v1114_v35, %v1110_v34 }
 0x156   : > { %v1163_v43 = vpack.c.bf16 %v1115_v40, %v1111_v39  ;;  %v848_v44 = vpop.f32.mrb[16].mxu0  ;;  %1963 = vmatpush1.bf16.msra.mxu0 %v3588_v32  ;;  %3173 = vmatpush3.bf16.msra.mxu1 %v3615_v33 }
 0x157   : > { %v921_v45 = vpop.f32.mrb[8].mxu1  ;;  %v1054_v48 = vadd.f32 %v4176_v8, %v848_v44  ;;  %v850_v6 = vpop.f32.mrb[17].mxu0  ;;  %1964 = vmatprep.subr.bf16.mxu0 %v3594_v37  ;;  %3174 = vmatprep.subr.bf16.mxu1 %v3619_v38  ;;  %v3606_v37 = vld [vmem:[%s4699_s5 + $0x25c] ss:$12 sps:$4 sm:$0xff]  }
 0x158   : > { %v1024_v49 = vadd.f32 %v4270_v36, %v921_v45  ;;  %v923_v50 = vpop.f32.mrb[9].mxu1  ;;  %v1055_v0 = vadd.f32 %v4181_v9, %v850_v6  ;;  %v852_v54 = vpop.f32.mrb[18].mxu0  ;;  %1901 = vmatprep.mubr.bf16.mxu0 %v1163_v43  ;;  %2121 = vmatprep.mubr.bf16.mxu1 %v1163_v43 }
 0x159   : > { %v1025_v53 = vadd.f32 %v4279_v41, %v923_v50  ;;  %v925_v55 = vpop.f32.mrb[10].mxu1  ;;  %v1058_v56 = vadd.f32 %v4176_v8, %v852_v54  ;;  %v854_v3 = vpop.f32.mrb[19].mxu0  ;;  %1902 = vmatmul.mubr.bf16.gmra.mrb[44].mxu0 %v1162_v42  ;;  %2122 = vmatmul.mubr.bf16.gmra.mrb[52].mxu1 %v1162_v42  ;;  %v1118_v15 = vmax.f32 %v1054_v48, 0.0 }
 0x15a   : > { %v1028_v57 = vadd.f32 %v4270_v36, %v925_v55  ;;  %v927_v10 = vpop.f32.mrb[11].mxu1  ;;  %v1059_v11 = vadd.f32 %v4181_v9, %v854_v3  ;;  %1965 = vmatpush1.bf16.msra.mxu0 %v3592_v46  ;;  %3175 = vmatpush3.bf16.msra.mxu1 %v3623_v47  ;;  %v1088_v16 = vmax.f32 %v1024_v49, 0.0  ;;  %v1119_v20 = vmax.f32 %v1055_v0, 0.0  ;;  %v3604_v49 = vld [vmem:[%s4699_s5 + $0x258] ss:$12 sps:$4 sm:$0xff]  }
 0x15b   : > { %v1029_v12 = vadd.f32 %v4279_v41, %v927_v10  ;;  %v1122_v17 = vmax.f32 %v1058_v56, 0.0  ;;  %1966 = vmatprep.subr.bf16.mxu0 %v3598_v51  ;;  %3176 = vmatprep.subr.bf16.mxu1 %v3627_v52  ;;  %v1089_v21 = vmax.f32 %v1025_v53, 0.0  ;;  %v3610_v0 = vld [vmem:[%s4699_s5 + $0x274] ss:$12 sps:$4 sm:$0xff]  }
 0x15c   : > { %v1092_v18 = vmax.f32 %v1028_v57, 0.0  ;;  %v1123_v22 = vmax.f32 %v1059_v11, 0.0 }
 0x15d   : > { %v1093_v24 = vmax.f32 %v1029_v12, 0.0  ;;  %v1166_v25 = vpack.c.bf16 %v1122_v17, %v1118_v15 }
 0x15e   : > { %v4310_v26 = vpack.c.bf16 %v1092_v18, %v1088_v16  ;;  %v1167_v27 = vpack.c.bf16 %v1123_v22, %v1119_v20  ;;  %v858_v29 = vpop.f32.mrb[20].mxu0  ;;  %1967 = vmatpush1.bf16.msra.mxu0 %v3596_v13  ;;  %3177 = vmatpush3.bf16.msra.mxu1 %v3631_v14  ;;  %v3608_v14 = vld [vmem:[%s4699_s5 + $0x270] ss:$12 sps:$4 sm:$0xff]  }
 0x15f   : > { %v4312_v28 = vpack.c.bf16 %v1093_v24, %v1089_v21  ;;  %v931_v30 = vpop.f32.mrb[12].mxu1  ;;  %v1062_v32 = vadd.f32 %v4176_v8, %v858_v29  ;;  %v860_v34 = vpop.f32.mrb[21].mxu0  ;;  %1968 = vmatprep.subr.bf16.mxu0 %v3602_v19  ;;  %v3614_v19 = vld [vmem:[%s4699_s5 + $0x28c] ss:$12 sps:$4 sm:$0xff]  }
 0x160   : > { %v1032_v33 = vadd.f32 %v4270_v36, %v931_v30  ;;  %v933_v35 = vpop.f32.mrb[13].mxu1  ;;  %v1063_v38 = vadd.f32 %v4181_v9, %v860_v34  ;;  %v862_v40 = vpop.f32.mrb[22].mxu0  ;;  %1911 = vmatprep.mubr.bf16.mxu0 %v1167_v27  ;;  %2129 = vmatprep.mubr.bf16.mxu1 %v1167_v27 }
 0x161   : > { %v1033_v39 = vadd.f32 %v4279_v41, %v933_v35  ;;  %v935_v42 = vpop.f32.mrb[14].mxu1  ;;  %v1066_v43 = vadd.f32 %v4176_v8, %v862_v40  ;;  %v864_v45 = vpop.f32.mrb[23].mxu0  ;;  %1912 = vmatmul.mubr.bf16.gmra.mrb[48].mxu0 %v1166_v25  ;;  %2130 = vmatmul.mubr.bf16.gmra.mrb[56].mxu1 %v1166_v25  ;;  %v1126_v6 = vmax.f32 %v1062_v32, 0.0 }
 0x162   : > { %v1036_v44 = vadd.f32 %v4270_v36, %v935_v42  ;;  %v937_v46 = vpop.f32.mrb[15].mxu1  ;;  %v1067_v47 = vadd.f32 %v4181_v9, %v864_v45  ;;  %1969 = vmatpush1.bf16.msra.mxu0 %v3600_v31  ;;  %v1096_v50 = vmax.f32 %v1032_v33, 0.0  ;;  %v1127_v53 = vmax.f32 %v1063_v38, 0.0  ;;  %v3612_v33 = vld [vmem:[%s4699_s5 + $0x288] ss:$12 sps:$4 sm:$0xff]  }
 0x163   : > { %v1037_v48 = vadd.f32 %v4279_v41, %v937_v46  ;;  %v1130_v51 = vmax.f32 %v1066_v43, 0.0  ;;  %1970 = vmatprep.subr.bf16.mxu0 %v3606_v37  ;;  %v1097_v54 = vmax.f32 %v1033_v39, 0.0  ;;  %v3618_v37 = vld [vmem:[%s4699_s5 + $0x2a4] ss:$12 sps:$4 sm:$0xff]  }
 0x164   : > { %v1100_v52 = vmax.f32 %v1036_v44, 0.0  ;;  %v1131_v55 = vmax.f32 %v1067_v47, 0.0 }
 0x165   : > { %v1101_v56 = vmax.f32 %v1037_v48, 0.0  ;;  %v1170_v57 = vpack.c.bf16 %v1130_v51, %v1126_v6 }
 0x166   : > { %v4334_v3 = vpack.c.bf16 %v1100_v52, %v1096_v50  ;;  %v1171_v10 = vpack.c.bf16 %v1131_v55, %v1127_v53  ;;  %v868_v12 = vpop.f32.mrb[24].mxu0  ;;  %1971 = vmatpush1.bf16.msra.mxu0 %v3604_v49 }
 0x167   : > { %v4336_v11 = vpack.c.bf16 %v1101_v56, %v1097_v54  ;;  %v941_v13 = vpop.f32.mrb[16].mxu1  ;;  %v869_v15 = vadd.f32 %v868_v12, %v4148_v58  ;;  %v870_v17 = vpop.f32.mrb[25].mxu0  ;;  %1972 = vmatprep.subr.bf16.mxu0 %v3610_v0 }
 0x168   : > { %v1040_v16 = vadd.f32 %v4270_v36, %v941_v13  ;;  %v943_v18 = vpop.f32.mrb[17].mxu1  ;;  %v871_v20 = vadd.f32 %v870_v17, %v4150_v59  ;;  %v872_v22 = vpop.f32.mrb[26].mxu0  ;;  %1921 = vmatprep.mubr.bf16.mxu0 %v1171_v10  ;;  %2137 = vmatprep.mubr.bf16.mxu1 %v1171_v10 }
 0x169   : > { %v1041_v21 = vadd.f32 %v4279_v41, %v943_v18  ;;  %v945_v24 = vpop.f32.mrb[18].mxu1  ;;  %v1070_v25 = vadd.f32 %v4176_v8, %v869_v15  ;;  %v873_v58 = vadd.f32 %v872_v22, %v4152_v60  ;;  %v874_v29 = vpop.f32.mrb[27].mxu0  ;;  %1922 = vmatmul.mubr.bf16.gmra.mrb[52].mxu0 %v1170_v57  ;;  %2138 = vmatmul.mubr.bf16.gmra.mrb[60].mxu1 %v1170_v57  ;;  %v3616_v57 = vld [vmem:[%s4699_s5 + $0x2a0] ss:$12 sps:$4 sm:$0xff]  }
 0x16a   : > { %v1044_v27 = vadd.f32 %v4270_v36, %v945_v24  ;;  %v947_v30 = vpop.f32.mrb[19].mxu1  ;;  %v1071_v31 = vadd.f32 %v4181_v9, %v871_v20  ;;  %v875_v59 = vadd.f32 %v874_v29, %v4154_v61  ;;  %1973 = vmatpush1.bf16.msra.mxu0 %v3608_v14  ;;  %v1104_v34 = vmax.f32 %v1040_v16, 0.0  ;;  %v3620_v24 = vld [vmem:[%s4699_s5 + $0x2b8] ss:$12 sps:$4 sm:$0xff]  }
 0x16b   : > { %v1045_v32 = vadd.f32 %v4279_v41, %v947_v30  ;;  %v1074_v60 = vadd.f32 %v4176_v8, %v873_v58  ;;  %1974 = vmatprep.subr.bf16.mxu0 %v3614_v19  ;;  %v1105_v38 = vmax.f32 %v1041_v21, 0.0  ;;  %v1134_v40 = vmax.f32 %v1070_v25, 0.0 }
 0x16c   : > { %v1108_v35 = vmax.f32 %v1044_v27, 0.0  ;;  %v1075_v39 = vadd.f32 %v4181_v9, %v875_v59  ;;  %v1135_v44 = vmax.f32 %v1071_v31, 0.0 }
 0x16d   : > { %v1109_v61 = vmax.f32 %v1045_v32, 0.0  ;;  %v1138_v42 = vmax.f32 %v1074_v60, 0.0 }
 0x16e   : > { %v4362_v43 = vpack.c.bf16 %v1108_v35, %v1104_v34  ;;  %v1139_v45 = vmax.f32 %v1075_v39, 0.0  ;;  %v878_v47 = vpop.f32.mrb[28].mxu0  ;;  %1975 = vmatpush1.bf16.msra.mxu0 %v3612_v33  ;;  %v3624_v35 = vld [vmem:[%s4699_s5 + $0x2d0] ss:$12 sps:$4 sm:$0xff]   ;;  %v3630_v39 = vld [vmem:[%s4699_s5 + $0x2ec] ss:$12 sps:$4 sm:$0xff]  }
 0x16f   : > { %v4364_v46 = vpack.c.bf16 %v1109_v61, %v1105_v38  ;;  %v951_v48 = vpop.f32.mrb[20].mxu1  ;;  %v879_v49 = vadd.f32 %v878_v47, %v4156_v62  ;;  %v880_v50 = vpop.f32.mrb[29].mxu0  ;;  %v1174_v52 = vpack.c.bf16 %v1138_v42, %v1134_v40  ;;  %1976 = vmatprep.subr.bf16.mxu0 %v3618_v37  ;;  %v3628_v47 = vld [vmem:[%s4699_s5 + $0x2e8] ss:$12 sps:$4 sm:$0xff]  }
 0x170   : > { %v1048_v6 = vadd.f32 %v4270_v36, %v951_v48  ;;  %v953_v51 = vpop.f32.mrb[21].mxu1  ;;  %v881_v0 = vadd.f32 %v880_v50, %v4158_v63  ;;  %v882_v54 = vpop.f32.mrb[30].mxu0  ;;  %v1175_v56 = vpack.c.bf16 %v1139_v45, %v1135_v44  ;;  %v3622_v63 = vld [vmem:[%s4699_s5 + $0x2bc] ss:$12 sps:$4 sm:$0xff]  }
 0x171   : > { %v1049_v53 = vadd.f32 %v4279_v41, %v953_v51  ;;  %v955_v55 = vpop.f32.mrb[22].mxu1  ;;  %v1078_v10 = vadd.f32 %v4176_v8, %v879_v49  ;;  %v883_v62 = vadd.f32 %v882_v54, %v4160_v1  ;;  %v884_v13 = vpop.f32.mrb[31].mxu0 }
 0x172   : > { %v1052_v12 = vadd.f32 %v4270_v36, %v955_v55  ;;  %v957_v14 = vpop.f32.mrb[23].mxu1  ;;  %v1079_v15 = vadd.f32 %v4181_v9, %v881_v0  ;;  %v885_v16 = vadd.f32 %v884_v13, %v4162_v2  ;;  %1931 = vmatprep.mubr.bf16.mxu0 %v1175_v56  ;;  %2145 = vmatprep.mubr.bf16.mxu1 %v1175_v56  ;;  %v1112_v18 = vmax.f32 %v1048_v6, 0.0 }
 0x173   : > { %v1053_v17 = vadd.f32 %v4279_v41, %v957_v14  ;;  %v1082_v19 = vadd.f32 %v4176_v8, %v883_v62  ;;  %1932 = vmatmul.mubr.bf16.gmra.mrb[56].mxu0 %v1174_v52  ;;  %2146 = vmatmul.mubr.bf16.gmra.mrb[64].mxu1 %v1174_v52  ;;  %v1113_v20 = vmax.f32 %v1049_v53, 0.0  ;;  %v1142_v2 = vmax.f32 %v1078_v10, 0.0  ;;  %v3626_v8 = vld [vmem:[%s4699_s5 + $0x2d4] ss:$12 sps:$4 sm:$0xff]  }
 0x174   : > { %v1116_v1 = vmax.f32 %v1052_v12, 0.0  ;;  %v1083_v21 = vadd.f32 %v4181_v9, %v885_v16  ;;  %1977 = vmatpush1.bf16.msra.mxu0 %v3616_v57  ;;  %v1143_v27 = vmax.f32 %v1079_v15, 0.0 }
 0x175   : > { %v1117_v22 = vmax.f32 %v1053_v17, 0.0  ;;  %v1146_v25 = vmax.f32 %v1082_v19, 0.0  ;;  %1978 = vmatprep.subr.bf16.mxu0 %v3622_v63 }
 0x176   : > { %v4387_v58 = vpack.c.bf16 %v1116_v1, %v1112_v18  ;;  %v1147_v29 = vmax.f32 %v1083_v21, 0.0 }
 0x177   : > { %v4392_v30 = vpack.c.bf16 %v1117_v22, %v1113_v20  ;;  %v961_v9 = vpop.f32.mrb[24].mxu1  ;;  %v1178_v32 = vpack.c.bf16 %v1146_v25, %v1142_v2 }
 0x178   : > { %v1056_v31 = vadd.f32 %v4270_v36, %v961_v9  ;;  %v963_v59 = vpop.f32.mrb[25].mxu1  ;;  %1979 = vmatpush1.bf16.msra.mxu0 %v3620_v24  ;;  %v1179_v60 = vpack.c.bf16 %v1147_v29, %v1143_v27 }
 0x179   : > { %v1057_v33 = vadd.f32 %v4279_v41, %v963_v59  ;;  %v965_v34 = vpop.f32.mrb[26].mxu1  ;;  %1980 = vmatprep.subr.bf16.mxu0 %v3626_v8 }
 0x17a   : > { %v1060_v37 = vadd.f32 %v4270_v36, %v965_v34  ;;  %v967_v38 = vpop.f32.mrb[27].mxu1  ;;  %1941 = vmatprep.mubr.bf16.mxu0 %v1179_v60  ;;  %2153 = vmatprep.mubr.bf16.mxu1 %v1179_v60  ;;  %v1120_v40 = vmax.f32 %v1056_v31, 0.0  ;;  %v3637_v60 = vld [vmem:[%s4701_s7 + $0x10] sm:$0xff]  }
 0x17b   : > { %v1061_v61 = vadd.f32 %v4279_v41, %v967_v38  ;;  %1942 = vmatmul.mubr.bf16.gmra.mrb[60].mxu0 %v1178_v32  ;;  %2154 = vmatmul.mubr.bf16.gmra.mrb[68].mxu1 %v1178_v32  ;;  %v1121_v44 = vmax.f32 %v1057_v33, 0.0  ;;  %v3640_v38 = vld [vmem:[%s4701_s7 + $0x60] sm:$0xff]  }
 0x17c   : > { %v1124_v42 = vmax.f32 %v1060_v37, 0.0  ;;  %1981 = vmatpush1.bf16.msra.mxu0 %v3624_v35  ;;  %1984 = vmatprep.mubr.bf16.mxu0 %v4312_v28  ;;  %v3638_v35 = vld [vmem:[%s4701_s7 + $0x58] sm:$0xff]  }
 0x17d   : > { %v1125_v45 = vmax.f32 %v1061_v61, 0.0  ;;  %2194 = vmatprep.mubr.bf16.mxu1 %v4312_v28  ;;  %1982 = vmatprep.subr.bf16.mxu0 %v3630_v39  ;;  %v3639_v37 = vld [vmem:[%s4701_s7 + $0x18] sm:$0xff]   ;;  %v3641_v39 = vld [vmem:[%s4701_s7 + $0x20] sm:$0xff]  }
 0x17e   : > { %v4408_v48 = vpack.c.bf16 %v1124_v42, %v1120_v40  ;;  %v3642_v61 = vld [vmem:[%s4701_s7 + $0x80] sm:$0xff]   ;;  %v3643_v40 = vld [vmem:[%s4701_s7 + $0x68] sm:$0xff]  }
 0x17f   : > { %v1169_v49 = vpack.c.bf16 %v1125_v45, %v1121_v44  ;;  %v971_v6 = vpop.f32.mrb[28].mxu1  ;;  %3306 = vmatprep.subr.bf16.mxu1 %v3642_v61  ;;  %v3644_v42 = vld [vmem:[%s4701_s7 + $0x28] sm:$0xff]   ;;  %v3648_v45 = vld [vmem:[%s4701_s7 + $0x90] sm:$0xff]  }
 0x180   : > { %v1064_v50 = vadd.f32 %v4270_v36, %v971_v6  ;;  %v973_v51 = vpop.f32.mrb[29].mxu1  ;;  %1983 = vmatpush1.bf16.msra.mxu0 %v3628_v47  ;;  %v3645_v44 = vld [vmem:[%s4701_s7 + $0x88] sm:$0xff]   ;;  %v3646_v47 = vld [vmem:[%s4701_s7 + $0x70] sm:$0xff]   ;;  %v3652_v6 = vld [vmem:[%s4701_s7 + $0xa0] sm:$0xff]  }
 0x181   : > { %v1065_v52 = vadd.f32 %v4279_v41, %v973_v51  ;;  %v975_v0 = vpop.f32.mrb[30].mxu1  ;;  %v3651_v51 = vld [vmem:[%s4701_s7 + $0x38] sm:$0xff]  }
 0x182   : > { %v1068_v53 = vadd.f32 %v4270_v36, %v975_v0  ;;  %v977_v54 = vpop.f32.mrb[31].mxu1  ;;  %v1128_v56 = vmax.f32 %v1064_v50, 0.0  ;;  %v3650_v50 = vld [vmem:[%s4701_s7 + $0x78] sm:$0xff]   ;;  %v3654_v0 = vld [vmem:[%s4701_s7 + $0xb0] sm:$0xff]  }
 0x183   : > { %v1069_v55 = vadd.f32 %v4279_v41, %v977_v54  ;;  %1985 = vmatmul.mubr.bf16.vlgmr.msra.gmra.mrb[32].mxu0 %v4310_v26  ;;  %2195 = vmatmul.mubr.bf16.vlgmr.msra.gmra.mrb[72].mxu1 %v4310_v26  ;;  %v1129_v28 = vmax.f32 %v1065_v52, 0.0  ;;  %v3653_v52 = vld [vmem:[%s4701_s7 + $0xa8] sm:$0xff]  }
 0x184   : > { %v1132_v57 = vmax.f32 %v1068_v53, 0.0  ;;  %1994 = vmatprep.mubr.bf16.mxu0 %v4336_v11  ;;  %2202 = vmatprep.mubr.bf16.mxu1 %v4336_v11  ;;  %v3655_v53 = vld [vmem:[%s4701_s7 + $0xb8] sm:$0xff]  }
 0x185   : > { %v1133_v10 = vmax.f32 %v1069_v55, 0.0  ;;  %3307 = vmatpush3.bf16.msra.mxu1 %v3642_v61  ;;  %v1310_v61 = vld [vmem:[%s4700_s6] sm:$0x7] }
 0x186   : > { %v1172_v62 = vpack.c.bf16 %v1132_v57, %v1128_v56  ;;  %3308 = vmatprep.subr.bf16.mxu1 %v3645_v44 }
 0x187   : > { %v1173_v12 = vpack.c.bf16 %v1133_v10, %v1129_v28  ;;  %v981_v13 = vpop.f32.mrb[32].mxu1 }
 0x188   : > { %v1072_v14 = vadd.f32 %v4270_v36, %v981_v13  ;;  %v983_v63 = vpop.f32.mrb[33].mxu1 }
 0x189   : > { %v1073_v15 = vadd.f32 %v4279_v41, %v983_v63  ;;  %v985_v16 = vpop.f32.mrb[34].mxu1  ;;  %3309 = vmatpush3.bf16.msra.mxu1 %v3645_v44  ;;  %v4544_v44 = vrot.slane %v1310_v61, %v1004_v5 }
 0x18a   : > { %v1076_v17 = vadd.f32 %v4270_v36, %v985_v16  ;;  %v987_v18 = vpop.f32.mrb[35].mxu1  ;;  %v1136_v19 = vmax.f32 %v1072_v14, 0.0  ;;  %3310 = vmatprep.subr.bf16.mxu1 %v3648_v45 }
 0x18b   : > { %v1077_v26 = vadd.f32 %v4279_v41, %v987_v18  ;;  %1995 = vmatmul.mubr.bf16.gmra.mrb[36].mxu0 %v4334_v3  ;;  %2203 = vmatmul.mubr.bf16.gmra.mrb[76].mxu1 %v4334_v3  ;;  %v1137_v11 = vmax.f32 %v1073_v15, 0.0 }
 0x18c   : > { %v1140_v1 = vmax.f32 %v1076_v17, 0.0  ;;  %2004 = vmatprep.mubr.bf16.mxu0 %v4364_v46  ;;  %2210 = vmatprep.mubr.bf16.mxu1 %v4364_v46 }
 0x18d   : > { %v1141_v20 = vmax.f32 %v1077_v26, 0.0  ;;  %3311 = vmatpush3.bf16.msra.mxu1 %v3648_v45  ;;  %v4548_v45 = vrot.slane %v1310_v61, %v1012_v23 }
 0x18e   : > { %v1176_v21 = vpack.c.bf16 %v1140_v1, %v1136_v19 }
 0x18f   : > { %v1177_v22 = vpack.c.bf16 %v1141_v20, %v1137_v11  ;;  %v991_v24 = vpop.f32.mrb[36].mxu1 }
 0x190   : > { %v1080_v2 = vadd.f32 %v4270_v36, %v991_v24  ;;  %v993_v25 = vpop.f32.mrb[37].mxu1 }
 0x191   : > { %v1081_v8 = vadd.f32 %v4279_v41, %v993_v25  ;;  %v995_v27 = vpop.f32.mrb[38].mxu1 }
 0x192   : > { %v1084_v29 = vadd.f32 %v4270_v36, %v995_v27  ;;  %v997_v9 = vpop.f32.mrb[39].mxu1  ;;  %v1144_v31 = vmax.f32 %v1080_v2, 0.0  ;;  %v3632_v36 = vld [vmem:[%s4701_s7 + $0x40] sm:$0xff]  }
 0x193   : > { %v1085_v3 = vadd.f32 %v4279_v41, %v997_v9  ;;  %2005 = vmatmul.mubr.bf16.gmra.mrb[40].mxu0 %v4362_v43  ;;  %2211 = vmatmul.mubr.bf16.gmra.mrb[80].mxu1 %v4362_v43  ;;  %v1145_v46 = vmax.f32 %v1081_v8, 0.0  ;;  %v3633_v41 = vld [vmem:[%s4701_s7] sm:$0xff]   ;;  %v3634_v43 = vld [vmem:[%s4701_s7 + $0x48] sm:$0xff]  }
 0x194   : > { %v1148_v59 = vmax.f32 %v1084_v29, 0.0  ;;  %2014 = vmatprep.mubr.bf16.mxu0 %v4392_v30  ;;  %2218 = vmatprep.mubr.bf16.mxu1 %v4392_v30  ;;  %v3636_v30 = vld [vmem:[%s4701_s7 + $0x50] sm:$0xff]  }
 0x195   : > { %v1149_v32 = vmax.f32 %v1085_v3, 0.0  ;;  %3226 = vmatprep.subr.bf16.mxu0 %v3632_v36 }
 0x196   : > { %v1180_v33 = vpack.c.bf16 %v1148_v59, %v1144_v31  ;;  %3227 = vmatpush3.bf16.msra.mxu0 %v3633_v41 }
 0x197   : > { %v1181_v34 = vpack.c.bf16 %v1149_v32, %v1145_v46  ;;  %3228 = vmatprep.subr.bf16.mxu0 %v3634_v43 }
 0x19b   : > { %2015 = vmatmul.mubr.bf16.gmra.mrb[44].mxu0 %v4387_v58  ;;  %2219 = vmatmul.mubr.bf16.gmra.mrb[84].mxu1 %v4387_v58  ;;  %v3635_v58 = vld [vmem:[%s4701_s7 + $0x8] sm:$0xff]  }
 0x19c   : > { %2024 = vmatprep.mubr.bf16.mxu0 %v1169_v49  ;;  %2226 = vmatprep.mubr.bf16.mxu1 %v1169_v49  ;;  %v3649_v49 = vld [vmem:[%s4701_s7 + $0x98] sm:$0xff]  }
 0x19d   : > { %3229 = vmatpush3.bf16.msra.mxu0 %v3635_v58  ;;  %3312 = vmatprep.subr.bf16.mxu1 %v3649_v49 }
 0x19e   : > { %3230 = vmatprep.subr.bf16.mxu0 %v3636_v30  ;;  %3313 = vmatpush3.bf16.msra.mxu1 %v3649_v49 }
 0x19f   : > { %3314 = vmatprep.subr.bf16.mxu1 %v3652_v6 }
 0x1a1   : > { %3231 = vmatpush3.bf16.msra.mxu0 %v3637_v60 }
 0x1a2   : > { %3232 = vmatprep.subr.bf16.mxu0 %v3638_v35  ;;  %3315 = vmatpush3.bf16.msra.mxu1 %v3652_v6 }
 0x1a3   : > { %2025 = vmatmul.mubr.bf16.gmra.mrb[48].mxu0 %v4408_v48  ;;  %2227 = vmatmul.mubr.bf16.gmra.mrb[88].mxu1 %v4408_v48  ;;  %v3647_v48 = vld [vmem:[%s4701_s7 + $0x30] sm:$0xff]  }
 0x1a4   : > { %2034 = vmatprep.mubr.bf16.mxu0 %v1173_v12  ;;  %2234 = vmatprep.mubr.bf16.mxu1 %v1173_v12 }
 0x1a5   : > { %3233 = vmatpush3.bf16.msra.mxu0 %v3639_v37  ;;  %3316 = vmatprep.subr.bf16.mxu1 %v3653_v52 }
 0x1a6   : > { %3234 = vmatprep.subr.bf16.mxu0 %v3640_v38  ;;  %3317 = vmatpush3.bf16.msra.mxu1 %v3653_v52 }
 0x1a7   : > { %3318 = vmatprep.subr.bf16.mxu1 %v3654_v0 }
 0x1a9   : > { %3235 = vmatpush3.bf16.msra.mxu0 %v3641_v39 }
 0x1aa   : > { %3236 = vmatprep.subr.bf16.mxu0 %v3643_v40  ;;  %3319 = vmatpush3.bf16.msra.mxu1 %v3654_v0 }
 0x1ab   : > { %2035 = vmatmul.mubr.bf16.gmra.mrb[52].mxu0 %v1172_v62  ;;  %2235 = vmatmul.mubr.bf16.gmra.mrb[92].mxu1 %v1172_v62 }
 0x1ac   : > { %2044 = vmatprep.mubr.bf16.mxu0 %v1177_v22  ;;  %2242 = vmatprep.mubr.bf16.mxu1 %v1177_v22 }
 0x1ad   : > { %3237 = vmatpush3.bf16.msra.mxu0 %v3644_v42  ;;  %3320 = vmatprep.subr.bf16.mxu1 %v3655_v53 }
 0x1ae   : > { %3238 = vmatprep.subr.bf16.mxu0 %v3646_v47  ;;  %3321 = vmatpush3.bf16.msra.mxu1 %v3655_v53  ;;  %v4552_v47 = vrot.slane %v1310_v61, %v1008_v7 }
 0x1b1   : > { %3239 = vmatpush3.bf16.msra.mxu0 %v3647_v48 }
 0x1b2   : > { %3240 = vmatprep.subr.bf16.mxu0 %v3650_v50 }
 0x1b3   : > { %2045 = vmatmul.mubr.bf16.gmra.mrb[56].mxu0 %v1176_v21  ;;  %2243 = vmatmul.mubr.bf16.gmra.mrb[96].mxu1 %v1176_v21 }
 0x1b4   : > { %2054 = vmatprep.mubr.bf16.mxu0 %v1181_v34  ;;  %2250 = vmatprep.mubr.bf16.mxu1 %v1181_v34 }
 0x1b5   : > { %3241 = vmatpush3.bf16.msra.mxu0 %v3651_v51 }
 0x1bb   : > { %2055 = vmatmul.mubr.bf16.gmra.mrb[60].mxu0 %v1180_v33  ;;  %2251 = vmatmul.mubr.bf16.gmra.mrb[100].mxu1 %v1180_v33 }
 0x214   : > { %v3114_v54 = vpop.f32.mrb[40].mxu1 }
 0x215   : > { %v3115_v55 = vpop.f32.mrb[41].mxu1 }
 0x216   : > { %v3116_v56 = vadd.f32 %v3115_v55, %v3114_v54  ;;  %v3117_v57 = vpop.f32.mrb[42].mxu1 }
 0x217   : > { %v3118_v28 = vpop.f32.mrb[43].mxu1 }
 0x218   : > { %v3119_v10 = vadd.f32 %v3118_v28, %v3117_v57  ;;  %v2100_v52 = vadd.f32 %v3116_v56, %v4548_v45 }
 0x21a   : > { %v2103_v4 = vadd.f32 %v3119_v10, %v4548_v45 }
 0x21c   : > { %v3120_v62 = vpop.f32.mrb[44].mxu1 }
 0x21d   : > { %v3121_v12 = vpop.f32.mrb[45].mxu1 }
 0x21e   : > { %v4511_v13 = vadd.f32 %v3121_v12, %v3120_v62  ;;  %v3123_v14 = vpop.f32.mrb[46].mxu1 }
 0x21f   : > { %v3124_v63 = vpop.f32.mrb[47].mxu1 }
 0x220   : > { %v4513_v15 = vadd.f32 %v3124_v63, %v3123_v14  ;;  %v2108_v10 = vadd.f32 %v4511_v13, %v4548_v45 }
 0x224   : > { %v3126_v16 = vpop.f32.mrb[48].mxu1 }
 0x225   : > { %v3127_v17 = vpop.f32.mrb[49].mxu1 }
 0x226   : > { %v4515_v18 = vadd.f32 %v3127_v17, %v3126_v16  ;;  %v3129_v26 = vpop.f32.mrb[50].mxu1 }
 0x227   : > { %v3130_v19 = vpop.f32.mrb[51].mxu1 }
 0x228   : > { %v4517_v1 = vadd.f32 %v3130_v19, %v3129_v26 }
 0x22c   : > { %v3132_v11 = vpop.f32.mrb[52].mxu1 }
 0x22d   : > { %v3133_v20 = vpop.f32.mrb[53].mxu1 }
 0x22e   : > { %v4519_v21 = vadd.f32 %v3133_v20, %v3132_v11  ;;  %v3135_v22 = vpop.f32.mrb[54].mxu1 }
 0x22f   : > { %v3136_v24 = vpop.f32.mrb[55].mxu1 }
 0x230   : > { %v4521_v2 = vadd.f32 %v3136_v24, %v3135_v22 }
 0x234   : > { %v3138_v25 = vpop.f32.mrb[56].mxu1 }
 0x235   : > { %v3139_v8 = vpop.f32.mrb[57].mxu1 }
 0x236   : > { %v4523_v27 = vadd.f32 %v3139_v8, %v3138_v25  ;;  %v3141_v29 = vpop.f32.mrb[58].mxu1 }
 0x237   : > { %v3142_v9 = vpop.f32.mrb[59].mxu1 }
 0x238   : > { %v4525_v3 = vadd.f32 %v3142_v9, %v3141_v29 }
 0x23c   : > { %v3144_v31 = vpop.f32.mrb[60].mxu1 }
 0x23d   : > { %v3145_v59 = vpop.f32.mrb[61].mxu1 }
 0x23e   : > { %v4527_v46 = vadd.f32 %v3145_v59, %v3144_v31  ;;  %v3147_v32 = vpop.f32.mrb[62].mxu1 }
 0x23f   : > { %v3148_v33 = vpop.f32.mrb[63].mxu1 }
 0x240   : > { %v4529_v34 = vadd.f32 %v3148_v33, %v3147_v32 }
 0x246   : > { %v3150_v36 = vpop.f32.mrb[64].mxu1 }
 0x247   : > { %v3151_v41 = vpop.f32.mrb[65].mxu1 }
 0x248   : > { %v4531_v43 = vadd.f32 %v3151_v41, %v3150_v36  ;;  %v3153_v58 = vpop.f32.mrb[66].mxu1 }
 0x249   : > { %v3154_v30 = vpop.f32.mrb[67].mxu1 }
 0x24a   : > { %v4533_v60 = vadd.f32 %v3154_v30, %v3153_v58  ;;  %v2111_v58 = vadd.f32 %v4513_v15, %v4548_v45 }
 0x24e   : > { %v3156_v35 = vpop.f32.mrb[68].mxu1 }
 0x24f   : > { %v3157_v37 = vpop.f32.mrb[69].mxu1 }
 0x250   : > { %v4535_v38 = vadd.f32 %v3157_v37, %v3156_v35  ;;  %v3159_v39 = vpop.f32.mrb[70].mxu1 }
 0x251   : > { %v3160_v40 = vpop.f32.mrb[71].mxu1 }
 0x252   : > { %v4540_v42 = vadd.f32 %v3160_v40, %v3159_v39 }
 0x256   : > { %v1986_v48 = vpop.f32.mrb[32].mxu0  ;;  %v3178_v49 = vpop.f32.mrb[72].mxu1 }
 0x257   : > { %v3348_v6 = vadd.f32 %v1986_v48, %v4544_v44  ;;  %v1988_v50 = vpop.f32.mrb[33].mxu0  ;;  %v3179_v51 = vpop.f32.mrb[73].mxu1 }
 0x258   : > { %v3349_v0 = vadd.f32 %v1988_v50, %v4552_v47  ;;  %v3180_v5 = vadd.f32 %v3179_v51, %v3178_v49  ;;  %v1990_v53 = vpop.f32.mrb[34].mxu0  ;;  %v3181_v54 = vpop.f32.mrb[74].mxu1 }
 0x259   : > { %v3350_v23 = vadd.f32 %v1990_v53, %v4544_v44  ;;  %v1992_v55 = vpop.f32.mrb[35].mxu0  ;;  %v3182_v57 = vpop.f32.mrb[75].mxu1  ;;  %v2259_v12 = vmax.f32 %v3348_v6, 0.0 }
 0x25a   : > { %v2197_v7 = vadd.f32 %v3180_v5, %v2100_v52  ;;  %v3351_v28 = vadd.f32 %v1992_v55, %v4552_v47  ;;  %v3183_v62 = vadd.f32 %v3182_v57, %v3181_v54  ;;  %v2260_v63 = vmax.f32 %v3349_v0, 0.0 }
 0x25b   : > { %v2262_v14 = vmax.f32 %v3350_v23, 0.0  ;;  %v2116_v54 = vadd.f32 %v4515_v18, %v4548_v45 }
 0x25c   : > { %v2263_v16 = vmax.f32 %v3351_v28, 0.0  ;;  %v2200_v56 = vadd.f32 %v3183_v62, %v2103_v4  ;;  %v2261_v26 = vmax.f32 %v2197_v7, 0.0 }
 0x25d   : > { %v2307_v17 = vpack.c.bf16 %v2262_v14, %v2259_v12  ;;  %v2119_v14 = vadd.f32 %v4517_v1, %v4548_v45 }
 0x25e   : > { %v2308_v19 = vpack.c.bf16 %v2263_v16, %v2260_v63  ;;  %v2264_v11 = vmax.f32 %v2200_v56, 0.0  ;;  %v1996_v20 = vpop.f32.mrb[36].mxu0  ;;  %v3184_v22 = vpop.f32.mrb[76].mxu1 }
 0x25f   : > { %v3352_v24 = vadd.f32 %v1996_v20, %v4544_v44  ;;  %v1998_v25 = vpop.f32.mrb[37].mxu0  ;;  %v3185_v8 = vpop.f32.mrb[77].mxu1 }
 0x260   : > { %v3353_v29 = vadd.f32 %v1998_v25, %v4552_v47  ;;  %v3186_v9 = vadd.f32 %v3185_v8, %v3184_v22  ;;  %v2000_v31 = vpop.f32.mrb[38].mxu0  ;;  %v3187_v59 = vpop.f32.mrb[78].mxu1  ;;  %2562 = vmatprep.mubr.bf16.mxu0 %v2308_v19  ;;  %v2309_v32 = vpack.c.bf16 %v2264_v11, %v2261_v26 }
 0x261   : > { %v3354_v33 = vadd.f32 %v2000_v31, %v4544_v44  ;;  %v2002_v36 = vpop.f32.mrb[39].mxu0  ;;  %v3188_v41 = vpop.f32.mrb[79].mxu1  ;;  %2563 = vmatmul.mubr.bf16.vlgmr.msra.gmra.mrb[64].mxu0 %v2307_v17  ;;  %v2265_v13 = vmax.f32 %v3352_v24, 0.0  ;;  %v2124_v31 = vadd.f32 %v4519_v21, %v4548_v45 }
 0x262   : > { %v2205_v30 = vadd.f32 %v3186_v9, %v2108_v10  ;;  %v3355_v35 = vadd.f32 %v2002_v36, %v4552_v47  ;;  %v3189_v37 = vadd.f32 %v3188_v41, %v3187_v59  ;;  %3322 = vmatprep.mubr.bf16.mxu1 %v2309_v32  ;;  %v2266_v61 = vmax.f32 %v3353_v29, 0.0 }
 0x263   : > { %v2268_v39 = vmax.f32 %v3354_v33, 0.0 }
 0x264   : > { %v2269_v40 = vmax.f32 %v3355_v35, 0.0  ;;  %v2208_v48 = vadd.f32 %v3189_v37, %v2111_v58  ;;  %v2267_v6 = vmax.f32 %v2205_v30, 0.0  ;;  %v2127_v37 = vadd.f32 %v4521_v2, %v4548_v45 }
 0x265   : > { %v2310_v49 = vpack.c.bf16 %v2268_v39, %v2265_v13 }
 0x266   : > { %v2311_v50 = vpack.c.bf16 %v2269_v40, %v2266_v61  ;;  %v2270_v51 = vmax.f32 %v2208_v48, 0.0  ;;  %v2006_v52 = vpop.f32.mrb[40].mxu0  ;;  %v3190_v0 = vpop.f32.mrb[80].mxu1 }
 0x267   : > { %v3356_v5 = vadd.f32 %v2006_v52, %v4544_v44  ;;  %v2008_v53 = vpop.f32.mrb[41].mxu0  ;;  %v3191_v15 = vpop.f32.mrb[81].mxu1 }
 0x268   : > { %v2312_v23 = vpack.c.bf16 %v2270_v51, %v2267_v6  ;;  %v3357_v55 = vadd.f32 %v2008_v53, %v4552_v47  ;;  %v3192_v57 = vadd.f32 %v3191_v15, %v3190_v0  ;;  %v2010_v4 = vpop.f32.mrb[42].mxu0  ;;  %v3193_v7 = vpop.f32.mrb[82].mxu1  ;;  %2570 = vmatprep.mubr.bf16.mxu0 %v2311_v50 }
 0x269   : > { %v3358_v28 = vadd.f32 %v2010_v4, %v4544_v44  ;;  %v2012_v62 = vpop.f32.mrb[43].mxu0  ;;  %v3194_v12 = vpop.f32.mrb[83].mxu1  ;;  %2571 = vmatmul.mubr.bf16.gmra.mrb[68].mxu0 %v2310_v49  ;;  %v2271_v18 = vmax.f32 %v3356_v5, 0.0 }
 0x26a   : > { %v2213_v63 = vadd.f32 %v3192_v57, %v2116_v54  ;;  %v3359_v16 = vadd.f32 %v2012_v62, %v4552_v47  ;;  %v3195_v56 = vadd.f32 %v3194_v12, %v3193_v7  ;;  %3323 = vmatmul.mubr.bf16.vlgmr.msra.gmra.mrb[104].mxu1 %v2312_v23  ;;  %v2272_v26 = vmax.f32 %v3357_v55, 0.0 }
 0x26b   : > { %v2274_v17 = vmax.f32 %v3358_v28, 0.0  ;;  %v2132_v23 = vadd.f32 %v4523_v27, %v4548_v45 }
 0x26c   : > { %v2275_v19 = vmax.f32 %v3359_v16, 0.0  ;;  %v2216_v11 = vadd.f32 %v3195_v56, %v2119_v14  ;;  %v2273_v22 = vmax.f32 %v2213_v63, 0.0  ;;  %v2135_v63 = vadd.f32 %v4525_v3, %v4548_v45 }
 0x26d   : > { %v2313_v20 = vpack.c.bf16 %v2274_v17, %v2271_v18 }
 0x26e   : > { %v2314_v24 = vpack.c.bf16 %v2275_v19, %v2272_v26  ;;  %v2276_v25 = vmax.f32 %v2216_v11, 0.0  ;;  %v2016_v8 = vpop.f32.mrb[44].mxu0  ;;  %v3196_v10 = vpop.f32.mrb[84].mxu1 }
 0x26f   : > { %v3360_v29 = vadd.f32 %v2016_v8, %v4544_v44  ;;  %v2018_v9 = vpop.f32.mrb[45].mxu0  ;;  %v3197_v1 = vpop.f32.mrb[85].mxu1 }
 0x270   : > { %v3361_v59 = vadd.f32 %v2018_v9, %v4552_v47  ;;  %v3198_v32 = vadd.f32 %v3197_v1, %v3196_v10  ;;  %v2020_v33 = vpop.f32.mrb[46].mxu0  ;;  %v3199_v36 = vpop.f32.mrb[86].mxu1  ;;  %2578 = vmatprep.mubr.bf16.mxu0 %v2314_v24  ;;  %v2315_v41 = vpack.c.bf16 %v2276_v25, %v2273_v22  ;;  %v2140_v1 = vadd.f32 %v4527_v46, %v4548_v45 }
 0x271   : > { %v3362_v58 = vadd.f32 %v2020_v33, %v4544_v44  ;;  %v2022_v30 = vpop.f32.mrb[47].mxu0  ;;  %v3200_v35 = vpop.f32.mrb[87].mxu1  ;;  %2579 = vmatmul.mubr.bf16.gmra.mrb[72].mxu0 %v2313_v20  ;;  %v2277_v21 = vmax.f32 %v3360_v29, 0.0 }
 0x272   : > { %v2221_v13 = vadd.f32 %v3198_v32, %v2124_v31  ;;  %v3363_v39 = vadd.f32 %v2022_v30, %v4552_v47  ;;  %v3201_v61 = vadd.f32 %v3200_v35, %v3199_v36  ;;  %3326 = vmatprep.mubr.bf16.mxu1 %v2315_v41  ;;  %v2278_v48 = vmax.f32 %v3361_v59, 0.0 }
 0x273   : > { %v2280_v40 = vmax.f32 %v3362_v58, 0.0  ;;  %v2143_v35 = vadd.f32 %v4529_v34, %v4548_v45 }
 0x274   : > { %v2281_v49 = vmax.f32 %v3363_v39, 0.0  ;;  %v2224_v6 = vadd.f32 %v3201_v61, %v2127_v37  ;;  %v2279_v51 = vmax.f32 %v2221_v13, 0.0 }
 0x275   : > { %v2316_v50 = vpack.c.bf16 %v2280_v40, %v2277_v21 }
 0x276   : > { %v2317_v52 = vpack.c.bf16 %v2281_v49, %v2278_v48  ;;  %v2282_v0 = vmax.f32 %v2224_v6, 0.0  ;;  %v2026_v5 = vpop.f32.mrb[48].mxu0  ;;  %v3202_v53 = vpop.f32.mrb[88].mxu1 }
 0x277   : > { %v3364_v15 = vadd.f32 %v2026_v5, %v4544_v44  ;;  %v2028_v54 = vpop.f32.mrb[49].mxu0  ;;  %v3203_v2 = vpop.f32.mrb[89].mxu1 }
 0x278   : > { %v3365_v55 = vadd.f32 %v2028_v54, %v4552_v47  ;;  %v3204_v57 = vadd.f32 %v3203_v2, %v3202_v53  ;;  %v2030_v4 = vpop.f32.mrb[50].mxu0  ;;  %v3205_v7 = vpop.f32.mrb[90].mxu1  ;;  %2586 = vmatprep.mubr.bf16.mxu0 %v2317_v52  ;;  %v2318_v28 = vpack.c.bf16 %v2282_v0, %v2279_v51 }
 0x279   : > { %v3366_v62 = vadd.f32 %v2030_v4, %v4544_v44  ;;  %v2032_v12 = vpop.f32.mrb[51].mxu0  ;;  %v3206_v14 = vpop.f32.mrb[91].mxu1  ;;  %2587 = vmatmul.mubr.bf16.gmra.mrb[76].mxu0 %v2316_v50  ;;  %v2283_v27 = vmax.f32 %v3364_v15, 0.0  ;;  %v2148_v15 = vadd.f32 %v4531_v43, %v4548_v45 }
 0x27a   : > { %v2229_v16 = vadd.f32 %v3204_v57, %v2132_v23  ;;  %v3367_v56 = vadd.f32 %v2032_v12, %v4552_v47  ;;  %v3207_v18 = vadd.f32 %v3206_v14, %v3205_v7  ;;  %3327 = vmatmul.mubr.bf16.gmra.mrb[108].mxu1 %v2318_v28  ;;  %v2284_v26 = vmax.f32 %v3365_v55, 0.0 }
 0x27b   : > { %v2286_v17 = vmax.f32 %v3366_v62, 0.0  ;;  %v2151_v62 = vadd.f32 %v4533_v60, %v4548_v45 }
 0x27c   : > { %v2287_v19 = vmax.f32 %v3367_v56, 0.0  ;;  %v2232_v11 = vadd.f32 %v3207_v18, %v2135_v63  ;;  %v2285_v22 = vmax.f32 %v2229_v16, 0.0 }
 0x27d   : > { %v2319_v20 = vpack.c.bf16 %v2286_v17, %v2283_v27 }
 0x27e   : > { %v2320_v24 = vpack.c.bf16 %v2287_v19, %v2284_v26  ;;  %v2288_v25 = vmax.f32 %v2232_v11, 0.0  ;;  %v2036_v8 = vpop.f32.mrb[52].mxu0  ;;  %v3208_v10 = vpop.f32.mrb[92].mxu1 }
 0x27f   : > { %v3368_v29 = vadd.f32 %v2036_v8, %v4544_v44  ;;  %v2038_v9 = vpop.f32.mrb[53].mxu0  ;;  %v3209_v3 = vpop.f32.mrb[93].mxu1  ;;  %v2156_v8 = vadd.f32 %v4535_v38, %v4548_v45 }
 0x280   : > { %v3369_v31 = vadd.f32 %v2038_v9, %v4552_v47  ;;  %v3210_v59 = vadd.f32 %v3209_v3, %v3208_v10  ;;  %v2040_v32 = vpop.f32.mrb[54].mxu0  ;;  %v3211_v33 = vpop.f32.mrb[94].mxu1  ;;  %2594 = vmatprep.mubr.bf16.mxu0 %v2320_v24  ;;  %v2321_v36 = vpack.c.bf16 %v2288_v25, %v2285_v22 }
 0x281   : > { %v3370_v41 = vadd.f32 %v2040_v32, %v4544_v44  ;;  %v2042_v58 = vpop.f32.mrb[55].mxu0  ;;  %v3212_v30 = vpop.f32.mrb[95].mxu1  ;;  %2595 = vmatmul.mubr.bf16.gmra.mrb[80].mxu0 %v2319_v20  ;;  %v2289_v46 = vmax.f32 %v3368_v29, 0.0 }
 0x282   : > { %v2237_v37 = vadd.f32 %v3210_v59, %v2140_v1  ;;  %v3371_v13 = vadd.f32 %v2042_v58, %v4552_v47  ;;  %v3213_v39 = vadd.f32 %v3212_v30, %v3211_v33  ;;  %3330 = vmatprep.mubr.bf16.mxu1 %v2321_v36  ;;  %v2290_v21 = vmax.f32 %v3369_v31, 0.0 }
 0x283   : > { %v2292_v61 = vmax.f32 %v3370_v41, 0.0  ;;  %v2159_v33 = vadd.f32 %v4540_v42, %v4548_v45 }
 0x284   : > { %v2293_v40 = vmax.f32 %v3371_v13, 0.0  ;;  %v2240_v48 = vadd.f32 %v3213_v39, %v2143_v35  ;;  %v2291_v6 = vmax.f32 %v2237_v37, 0.0 }
 0x285   : > { %v2322_v49 = vpack.c.bf16 %v2292_v61, %v2289_v46 }
 0x286   : > { %v2323_v50 = vpack.c.bf16 %v2293_v40, %v2290_v21  ;;  %v2294_v51 = vmax.f32 %v2240_v48, 0.0  ;;  %v2046_v52 = vpop.f32.mrb[56].mxu0  ;;  %v3214_v0 = vpop.f32.mrb[96].mxu1 }
 0x287   : > { %v3372_v5 = vadd.f32 %v2046_v52, %v4544_v44  ;;  %v2048_v53 = vpop.f32.mrb[57].mxu0  ;;  %v3215_v34 = vpop.f32.mrb[97].mxu1 }
 0x288   : > { %v3373_v54 = vadd.f32 %v2048_v53, %v4552_v47  ;;  %v3216_v2 = vadd.f32 %v3215_v34, %v3214_v0  ;;  %v2050_v23 = vpop.f32.mrb[58].mxu0  ;;  %v3217_v55 = vpop.f32.mrb[98].mxu1  ;;  %2602 = vmatprep.mubr.bf16.mxu0 %v2323_v50  ;;  %v2324_v57 = vpack.c.bf16 %v2294_v51, %v2291_v6  ;;  %v4619_v6 = vld [vmem:[%s4702_s8] ss:$0 sm:$0xff] }
 0x289   : > { %v3374_v4 = vadd.f32 %v2050_v23, %v4544_v44  ;;  %v2052_v7 = vpop.f32.mrb[59].mxu0  ;;  %v3218_v28 = vpop.f32.mrb[99].mxu1  ;;  %2603 = vmatmul.mubr.bf16.gmra.mrb[84].mxu0 %v2322_v49  ;;  %v2295_v43 = vmax.f32 %v3372_v5, 0.0 }
 0x28a   : > { %v2245_v12 = vadd.f32 %v3216_v2, %v2148_v15  ;;  %v3375_v14 = vadd.f32 %v2052_v7, %v4552_v47  ;;  %v3219_v63 = vadd.f32 %v3218_v28, %v3217_v55  ;;  %3331 = vmatmul.mubr.bf16.gmra.mrb[112].mxu1 %v2324_v57  ;;  %v2296_v56 = vmax.f32 %v3373_v54, 0.0 }
 0x28b   : > { %v2298_v16 = vmax.f32 %v3374_v4, 0.0 }
 0x28c   : > { %v2299_v18 = vmax.f32 %v3375_v14, 0.0  ;;  %v2248_v27 = vadd.f32 %v3219_v63, %v2151_v62  ;;  %v2297_v26 = vmax.f32 %v2245_v12, 0.0 }
 0x28d   : > { %v2325_v17 = vpack.c.bf16 %v2298_v16, %v2295_v43 }
 0x28e   : > { %v2326_v19 = vpack.c.bf16 %v2299_v18, %v2296_v56  ;;  %v2300_v11 = vmax.f32 %v2248_v27, 0.0  ;;  %v2056_v20 = vpop.f32.mrb[60].mxu0  ;;  %v3220_v22 = vpop.f32.mrb[100].mxu1 }
 0x28f   : > { %v3376_v24 = vadd.f32 %v2056_v20, %v4544_v44  ;;  %v2058_v25 = vpop.f32.mrb[61].mxu0  ;;  %v3221_v60 = vpop.f32.mrb[101].mxu1 }
 0x290   : > { %v3377_v10 = vadd.f32 %v2058_v25, %v4552_v47  ;;  %v3222_v29 = vadd.f32 %v3221_v60, %v3220_v22  ;;  %v2060_v9 = vpop.f32.mrb[62].mxu0  ;;  %v3223_v3 = vpop.f32.mrb[102].mxu1  ;;  %2610 = vmatprep.mubr.bf16.mxu0 %v2326_v19  ;;  %v2327_v1 = vpack.c.bf16 %v2300_v11, %v2297_v26  ;;  %v3688_v25 = vld [vmem:[%s3856_s13] sm:$0xff] }
 0x291   : > { %v3378_v31 = vadd.f32 %v2060_v9, %v4544_v44  ;;  %v2062_v59 = vpop.f32.mrb[63].mxu0  ;;  %v3224_v32 = vpop.f32.mrb[103].mxu1  ;;  %2611 = vmatmul.mubr.bf16.gmra.mrb[88].mxu0 %v2325_v17  ;;  %v2301_v38 = vmax.f32 %v3376_v24, 0.0 }
 0x292   : > { %v2253_v36 = vadd.f32 %v3222_v29, %v2156_v8  ;;  %v3379_v41 = vadd.f32 %v2062_v59, %v4552_v47  ;;  %v3225_v58 = vadd.f32 %v3224_v32, %v3223_v3  ;;  %3334 = vmatprep.mubr.bf16.mxu1 %v2327_v1  ;;  %v2302_v35 = vmax.f32 %v3377_v10, 0.0 }
 0x293   : > { %v2304_v30 = vmax.f32 %v3378_v31, 0.0 }
 0x294   : > { %v2305_v37 = vmax.f32 %v3379_v41, 0.0  ;;  %v2256_v13 = vadd.f32 %v3225_v58, %v2159_v33  ;;  %v2303_v46 = vmax.f32 %v2253_v36, 0.0  ;;  %v3689_v41 = vld [vmem:[%s3856_s13 + $0x8] sm:$0xff] }
 0x295   : > { %v2328_v39 = vpack.c.bf16 %v2304_v30, %v2301_v38 }
 0x296   : > { %v2329_v61 = vpack.c.bf16 %v2305_v37, %v2302_v35  ;;  %v2306_v44 = vmax.f32 %v2256_v13, 0.0  ;;  %v3690_v37 = vld [vmem:[%s3856_s13 + $0x10] sm:$0xff] }
 0x298   : > { %2618 = vmatprep.mubr.bf16.mxu0 %v2329_v61  ;;  %v2330_v21 = vpack.c.bf16 %v2306_v44, %v2303_v46 }
 0x299   : > { %2619 = vmatmul.mubr.bf16.gmra.mrb[92].mxu0 %v2328_v39 }
 0x29a   : > { %3335 = vmatmul.mubr.bf16.gmra.mrb[116].mxu1 %v2330_v21 }
 0x334   : > { %v3242_v40 = vpop.f32.mrb[64].mxu0 }
 0x335   : > { %v3243_v42 = vpop.f32.mrb[65].mxu0 }
 0x336   : > { %v3244_v45 = vadd.f32 %v3243_v42, %v3242_v40  ;;  %v3245_v48 = vpop.f32.mrb[66].mxu0  ;;  %v3691_v42 = vld [vmem:[%s3856_s13 + $0x18] sm:$0xff] }
 0x337   : > { %v3246_v47 = vpop.f32.mrb[67].mxu0 }
 0x338   : > { %v3247_v49 = vadd.f32 %v3246_v47, %v3245_v48  ;;  %v2565_v0 = vadd.f32 %v3244_v45, %v4619_v6 }
 0x33a   : > { %v2568_v23 = vadd.f32 %v3247_v49, %v4619_v6 }
 0x33c   : > { %v3248_v50 = vpop.f32.mrb[68].mxu0 }
 0x33d   : > { %v3249_v51 = vpop.f32.mrb[69].mxu0  ;;  %v3324_v52 = vpop.f32.mrb[104].mxu1 }
 0x33e   : > { %v3250_v5 = vadd.f32 %v3249_v51, %v3248_v50  ;;  %v3251_v53 = vpop.f32.mrb[70].mxu0  ;;  %v2661_v34 = vpop.f32.mrb[105].mxu1 }
 0x33f   : > { %v2662_v15 = vadd.f32 %v2661_v34, %v2565_v0  ;;  %v3252_v54 = vpop.f32.mrb[71].mxu0  ;;  %v3325_v2 = vpop.f32.mrb[106].mxu1 }
 0x340   : > { %v2573_v55 = vadd.f32 %v3250_v5, %v4619_v6  ;;  %v3253_v57 = vadd.f32 %v3252_v54, %v3251_v53  ;;  %v2664_v4 = vpop.f32.mrb[107].mxu1 }
 0x341   : > { %3656 = vtanh.f32 %v2662_v15  ;;  %v2665_v7 = vadd.f32 %v2664_v4, %v2568_v23  ;;  %v3692_v4 = vld [vmem:[%s3856_s13 + $0x20] sm:$0xff] }
 0x342   : > { %v2670_v28 = vadd.f32 %v3324_v52, %v2573_v55  ;;  %v2576_v62 = vadd.f32 %v3253_v57, %v4619_v6 }
 0x343   : > { %3658 = vtanh.f32 %v2665_v7 }
 0x344   : > { %3660 = vtanh.f32 %v2670_v28  ;;  %v2673_v12 = vadd.f32 %v3325_v2, %v2576_v62  ;;  %v3254_v14 = vpop.f32.mrb[72].mxu0 }
 0x345   : > { %v3255_v63 = vpop.f32.mrb[73].mxu0 }
 0x346   : > { %3662 = vtanh.f32 %v2673_v12  ;;  %v3256_v43 = vadd.f32 %v3255_v63, %v3254_v14  ;;  %v3257_v16 = vpop.f32.mrb[74].mxu0 }
 0x347   : > { %v3258_v56 = vpop.f32.mrb[75].mxu0 }
 0x348   : > { %v3259_v18 = vadd.f32 %v3258_v56, %v3257_v16  ;;  %v2581_v22 = vadd.f32 %v3256_v43, %v4619_v6 }
 0x34a   : > { %v2584_v32 = vadd.f32 %v3259_v18, %v4619_v6 }
 0x34b   : > { %v3657_v27 = vpop.eup %3656 }
 0x34c   : > { %v2740_v17 = vmul.f32 0.05, %v3657_v27  ;;  %v3260_v26 = vpop.f32.mrb[76].mxu0 }
 0x34d   : > { %v3659_v19 = vpop.eup %3658  ;;  %v3261_v11 = vpop.f32.mrb[77].mxu0 }
 0x34e   : > { %v3328_v20 = vpop.f32.mrb[108].mxu1  ;;  %v3661_v24 = vpop.eup %3660  ;;  %v2756_v60 = vadd.f32 %v3688_v25, %v2740_v17  ;;  %v2741_v8 = vmul.f32 0.05, %v3659_v19  ;;  %v3262_v10 = vadd.f32 %v3261_v11, %v3260_v26  ;;  %v3693_v26 = vld [vmem:[%s3856_s13 + $0x28] sm:$0xff] }
 0x34f   : > { %v3263_v29 = vpop.f32.mrb[78].mxu0  ;;  %v2677_v9 = vpop.f32.mrb[109].mxu1  ;;  %v2742_v3 = vmul.f32 0.05, %v3661_v24  ;;  %v3694_v24 = vld [vmem:[%s3856_s13 + $0x30] sm:$0xff] }
 0x350   : > { %v2678_v1 = vadd.f32 %v2677_v9, %v2581_v22  ;;  %v3264_v31 = vpop.f32.mrb[79].mxu0  ;;  %v3329_v59 = vpop.f32.mrb[110].mxu1  ;;  %v3080_v36 = vclamps-f32 %v2756_v60, 1.0  ;;  %v2757_v58 = vadd.f32 %v3689_v41, %v2741_v8  ;;  %v2589_v38 = vadd.f32 %v3262_v10, %v4619_v6 }
 0x351   : > { %v3663_v33 = vpop.eup %3662  ;;  %v3265_v30 = vadd.f32 %v3264_v31, %v3263_v29  ;;  %v2680_v35 = vpop.f32.mrb[111].mxu1  ;;  %v2758_v13 = vadd.f32 %v3690_v37, %v2742_v3 }
 0x352   : > { %v2743_v39 = vmul.f32 0.05, %v3663_v33  ;;  %3664 = vtanh.f32 %v2678_v1  ;;  %v2681_v46 = vadd.f32 %v2680_v35, %v2584_v32  ;;  %2804 = vst.msk [vmem:[%s4631_s19] sm:$0xff] %vm440_vm2, %v3080_v36  ;;  %v3081_v61 = vclamps-f32 %v2757_v58, 1.0  ;;  %v3695_v1 = vld [vmem:[%s3856_s13 + $0x38] sm:$0xff] }
 0x353   : > { %v2686_v44 = vadd.f32 %v3328_v20, %v2589_v38  ;;  %v2592_v21 = vadd.f32 %v3265_v30, %v4619_v6  ;;  %v3082_v40 = vclamps-f32 %v2758_v13, 1.0 }
 0x354   : > { %v2759_v45 = vadd.f32 %v3691_v42, %v2743_v39  ;;  %3666 = vtanh.f32 %v2681_v46  ;;  %2805 = vst.msk [vmem:[%s4631_s19 + $0x8] sm:$0xff] %vm440_vm2, %v3081_v61  ;;  %v3266_v47 = vpop.f32.mrb[80].mxu0 }
 0x355   : > { %3668 = vtanh.f32 %v2686_v44  ;;  %v2689_v48 = vadd.f32 %v3329_v59, %v2592_v21  ;;  %2806 = vst.msk [vmem:[%s4631_s19 + $0x10] sm:$0xff] %vm440_vm2, %v3082_v40  ;;  %v3267_v50 = vpop.f32.mrb[81].mxu0  ;;  %v3696_v40 = vld [vmem:[%s3856_s13 + $0x40] sm:$0xff] }
 0x356   : > { %v3083_v49 = vclamps-f32 %v2759_v45, 1.0  ;;  %v3268_v51 = vadd.f32 %v3267_v50, %v3266_v47  ;;  %v3269_v52 = vpop.f32.mrb[82].mxu0 }
 0x357   : > { %3670 = vtanh.f32 %v2689_v48  ;;  %v3270_v0 = vpop.f32.mrb[83].mxu0 }
 0x358   : > { %2807 = vst.msk [vmem:[%s4631_s19 + $0x18] sm:$0xff] %vm440_vm2, %v3083_v49  ;;  %v3271_v5 = vadd.f32 %v3270_v0, %v3269_v52  ;;  %v2597_v55 = vadd.f32 %v3268_v51, %v4619_v6 }
 0x35a   : > { %v2600_v18 = vadd.f32 %v3271_v5, %v4619_v6 }
 0x35c   : > { %v3665_v53 = vpop.eup %3664  ;;  %v3272_v15 = vpop.f32.mrb[84].mxu0 }
 0x35d   : > { %v2744_v34 = vmul.f32 0.05, %v3665_v53  ;;  %v3273_v2 = vpop.f32.mrb[85].mxu0  ;;  %v3332_v23 = vpop.f32.mrb[112].mxu1 }
 0x35e   : > { %v3667_v54 = vpop.eup %3666  ;;  %v3274_v62 = vadd.f32 %v3273_v2, %v3272_v15  ;;  %v3275_v12 = vpop.f32.mrb[86].mxu0  ;;  %v3697_v15 = vld [vmem:[%s3856_s13 + $0x48] sm:$0xff] }
 0x35f   : > { %v3669_v57 = vpop.eup %3668  ;;  %v2760_v7 = vadd.f32 %v3692_v4, %v2744_v34  ;;  %v2745_v28 = vmul.f32 0.05, %v3667_v54  ;;  %v2693_v14 = vpop.f32.mrb[113].mxu1 }
 0x360   : > { %v2746_v63 = vmul.f32 0.05, %v3669_v57  ;;  %v2694_v43 = vadd.f32 %v2693_v14, %v2597_v55  ;;  %v3276_v16 = vpop.f32.mrb[87].mxu0  ;;  %v3333_v56 = vpop.f32.mrb[114].mxu1  ;;  %v2605_v11 = vadd.f32 %v3274_v62, %v4619_v6  ;;  %v3698_v57 = vld [vmem:[%s3856_s13 + $0x50] sm:$0xff] }
 0x361   : > { %v3671_v27 = vpop.eup %3670  ;;  %v3084_v17 = vclamps-f32 %v2760_v7, 1.0  ;;  %v2761_v19 = vadd.f32 %v3693_v26, %v2745_v28  ;;  %v3277_v20 = vadd.f32 %v3276_v16, %v3275_v12  ;;  %v2696_v22 = vpop.f32.mrb[115].mxu1 }
 0x362   : > { %v2762_v25 = vadd.f32 %v3694_v24, %v2746_v63  ;;  %v2747_v60 = vmul.f32 0.05, %v3671_v27  ;;  %3672 = vtanh.f32 %v2694_v43  ;;  %v2697_v8 = vadd.f32 %v2696_v22, %v2600_v18  ;;  %v3699_v43 = vld [vmem:[%s3856_s13 + $0x58] sm:$0xff] }
 0x363   : > { %2808 = vst.msk [vmem:[%s4631_s19 + $0x20] sm:$0xff] %vm440_vm2, %v3084_v17  ;;  %v3085_v10 = vclamps-f32 %v2761_v19, 1.0  ;;  %v2702_v29 = vadd.f32 %v3332_v23, %v2605_v11  ;;  %v2608_v9 = vadd.f32 %v3277_v20, %v4619_v6  ;;  %v3700_v19 = vld [vmem:[%s3856_s13 + $0x60] sm:$0xff] }
 0x364   : > { %v3086_v3 = vclamps-f32 %v2762_v25, 1.0  ;;  %v2763_v31 = vadd.f32 %v3695_v1, %v2747_v60  ;;  %3674 = vtanh.f32 %v2697_v8  ;;  %v3278_v32 = vpop.f32.mrb[88].mxu0  ;;  %v3701_v60 = vld [vmem:[%s3856_s13 + $0x68] sm:$0xff] }
 0x365   : > { %2809 = vst.msk [vmem:[%s4631_s19 + $0x28] sm:$0xff] %vm440_vm2, %v3085_v10  ;;  %3676 = vtanh.f32 %v2702_v29  ;;  %v2705_v59 = vadd.f32 %v3333_v56, %v2608_v9  ;;  %v3279_v36 = vpop.f32.mrb[89].mxu0  ;;  %v3702_v10 = vld [vmem:[%s3856_s13 + $0x70] sm:$0xff] }
 0x366   : > { %2810 = vst.msk [vmem:[%s4631_s19 + $0x30] sm:$0xff] %vm440_vm2, %v3086_v3  ;;  %v3087_v33 = vclamps-f32 %v2763_v31, 1.0  ;;  %v3280_v41 = vadd.f32 %v3279_v36, %v3278_v32  ;;  %v3281_v58 = vpop.f32.mrb[90].mxu0  ;;  %v3703_v31 = vld [vmem:[%s3856_s13 + $0x78] sm:$0xff] }
 0x367   : > { %3678 = vtanh.f32 %v2705_v59  ;;  %v3282_v38 = vpop.f32.mrb[91].mxu0 }
 0x368   : > { %2811 = vst.msk [vmem:[%s4631_s19 + $0x38] sm:$0xff] %vm440_vm2, %v3087_v33  ;;  %v3283_v30 = vadd.f32 %v3282_v38, %v3281_v58  ;;  %v2613_v44 = vadd.f32 %v3280_v41, %v4619_v6 }
 0x36a   : > { %v2616_v5 = vadd.f32 %v3283_v30, %v4619_v6 }
 0x36c   : > { %v3673_v35 = vpop.eup %3672  ;;  %v3284_v13 = vpop.f32.mrb[92].mxu0 }
 0x36d   : > { %v2748_v37 = vmul.f32 0.05, %v3673_v35  ;;  %v3285_v46 = vpop.f32.mrb[93].mxu0  ;;  %v3336_v61 = vpop.f32.mrb[116].mxu1 }
 0x36e   : > { %v3675_v39 = vpop.eup %3674  ;;  %v3286_v48 = vadd.f32 %v3285_v46, %v3284_v13  ;;  %v3287_v47 = vpop.f32.mrb[94].mxu0 }
 0x36f   : > { %v3677_v21 = vpop.eup %3676  ;;  %v2764_v42 = vadd.f32 %v3696_v40, %v2748_v37  ;;  %v2749_v45 = vmul.f32 0.05, %v3675_v39  ;;  %v2709_v49 = vpop.f32.mrb[117].mxu1 }
 0x370   : > { %v2750_v50 = vmul.f32 0.05, %v3677_v21  ;;  %v2710_v51 = vadd.f32 %v2709_v49, %v2613_v44  ;;  %v3288_v52 = vpop.f32.mrb[95].mxu0  ;;  %v3337_v0 = vpop.f32.mrb[118].mxu1  ;;  %v2621_v2 = vadd.f32 %v3286_v48, %v4619_v6 }
 0x371   : > { %v3679_v53 = vpop.eup %3678  ;;  %v3088_v34 = vclamps-f32 %v2764_v42, 1.0  ;;  %v2765_v54 = vadd.f32 %v3697_v15, %v2749_v45  ;;  %v3289_v23 = vadd.f32 %v3288_v52, %v3287_v47  ;;  %v2712_v55 = vpop.f32.mrb[119].mxu1 }
 0x372   : > { %v2766_v4 = vadd.f32 %v3698_v57, %v2750_v50  ;;  %v2751_v7 = vmul.f32 0.05, %v3679_v53  ;;  %3680 = vtanh.f32 %v2710_v51  ;;  %v2713_v28 = vadd.f32 %v2712_v55, %v2616_v5 }
 0x373   : > { %2812 = vst.msk [vmem:[%s4631_s19 + $0x40] sm:$0xff] %vm440_vm2, %v3088_v34  ;;  %v3089_v62 = vclamps-f32 %v2765_v54, 1.0  ;;  %v2718_v12 = vadd.f32 %v3336_v61, %v2621_v2  ;;  %v2624_v14 = vadd.f32 %v3289_v23, %v4619_v6 }
 0x374   : > { %v3090_v63 = vclamps-f32 %v2766_v4, 1.0  ;;  %v2767_v16 = vadd.f32 %v3699_v43, %v2751_v7  ;;  %3682 = vtanh.f32 %v2713_v28 }
 0x375   : > { %2813 = vst.msk [vmem:[%s4631_s19 + $0x48] sm:$0xff] %vm440_vm2, %v3089_v62  ;;  %3684 = vtanh.f32 %v2718_v12  ;;  %v2721_v56 = vadd.f32 %v3337_v0, %v2624_v14 }
 0x376   : > { %2814 = vst.msk [vmem:[%s4631_s19 + $0x50] sm:$0xff] %vm440_vm2, %v3090_v63  ;;  %v3091_v18 = vclamps-f32 %v2767_v16, 1.0 }
 0x377   : > { %3686 = vtanh.f32 %v2721_v56 }
 0x378   : > { %2815 = vst.msk [vmem:[%s4631_s19 + $0x58] sm:$0xff] %vm440_vm2, %v3091_v18 }
 0x37c   : > { %v3681_v27 = vpop.eup %3680 }
 0x37d   : > { %v2752_v6 = vmul.f32 0.05, %v3681_v27 }
 0x37e   : > { %v3683_v17 = vpop.eup %3682 }
 0x37f   : > { %v3685_v26 = vpop.eup %3684  ;;  %v2768_v11 = vadd.f32 %v3700_v19, %v2752_v6  ;;  %v2753_v20 = vmul.f32 0.05, %v3683_v17 }
 0x380   : > { %v2754_v22 = vmul.f32 0.05, %v3685_v26 }
 0x381   : > { %v3687_v24 = vpop.eup %3686  ;;  %v3092_v25 = vclamps-f32 %v2768_v11, 1.0  ;;  %v2769_v8 = vadd.f32 %v3701_v60, %v2753_v20 }
 0x382   : > { %v2770_v29 = vadd.f32 %v3702_v10, %v2754_v22  ;;  %v2755_v9 = vmul.f32 0.05, %v3687_v24 }
 0x383   : > { %2816 = vst.msk [vmem:[%s4631_s19 + $0x60] sm:$0xff] %vm440_vm2, %v3092_v25  ;;  %v3093_v3 = vclamps-f32 %v2769_v8, 1.0 }
 0x384   : > { %v3094_v1 = vclamps-f32 %v2770_v29, 1.0  ;;  %v2771_v59 = vadd.f32 %v3703_v31, %v2755_v9 }
 0x385   : > { %2817 = vst.msk [vmem:[%s4631_s19 + $0x68] sm:$0xff] %vm440_vm2, %v3093_v3 }
 0x386   : > { %2818 = vst.msk [vmem:[%s4631_s19 + $0x70] sm:$0xff] %vm440_vm2, %v3094_v1  ;;  %v3095_v32 = vclamps-f32 %v2771_v59, 1.0 }
 0x388   : > { %2819 = vst.msk [vmem:[%s4631_s19 + $0x78] sm:$0xff] %vm440_vm2, %v3095_v32 }
 0x389 PF: > { %s20_s30 = sadd.s32 1, %s3742_s30  }
 0x38a   : > { %p17_p3 = scmp.ge.s32.totalorder %s20_s30, 4  }
 0x38c   :  { %19 = sbr.rel (!%p17_p3) target bundleno = 1 (0x1), region = 94 }
 0x393   :  { %2842 = vsyncpa [#allocation3], 1 }
 0x394   :  { %2844 = vsyncpa [#allocation3 + $0x1], 1 }

</bundles_post_ra>
